<compile_context>
chip_gen: v6e
topology: v6e:2x2x1
jax: 0.10.0
libtpu: 0.0.40
codegen_flags: <defaults>
</compile_context>

<pallas_src>
import jax
import jax.numpy as jnp
from jax.experimental import pallas as pl
from jax.experimental.pallas import tpu as pltpu

_LANE = 128
_SUBLANE = 8
_NEG_SLOPE = 0.2


def _round_up(x, m):
    return (x + m - 1) // m * m


def discriminator_kernel(x_ref,
                         w1_ref, b1_ref,
                         w2_ref, b2_ref,
                         w3_ref, b3_ref,
                         w4_ref, b4_ref,
                         o_ref):
    """Fused 4-layer MLP on one batch tile.

    Layers 1-3: (tb, d_in) @ (d_in, d_out) bf16 MXU matmuls with f32
    accumulation, f32 bias add + LeakyReLU(0.2).  Layer 4 is computed
    transposed (q·kᵀ pattern): (8, hidden) @ (tb, hidden)^T -> (8, tb), where
    only row 0 carries the real weight vector; sigmoid + store touch only the
    lane-dense (1, tb) logit row.
    """
    def leaky_relu(h):
        return jnp.where(h > 0, h, _NEG_SLOPE * h)

    # If the caller already supplies bf16 x (cast fused upstream), this is a no-op.
    x = x_ref[...].astype(jnp.bfloat16)

    # Layer 1: input_dim -> 4*hidden
    h = jnp.dot(x, w1_ref[...], preferred_element_type=jnp.float32) + b1_ref[...]
    h = leaky_relu(h)
    # TODO(synk): nn.Dropout(0.3) is identity in eval mode; training-mode dropout not implemented.

    # Layer 2: 4*hidden -> 2*hidden
    h = jnp.dot(h.astype(jnp.bfloat16), w2_ref[...],
                preferred_element_type=jnp.float32) + b2_ref[...]
    h = leaky_relu(h)

    # Layer 3: 2*hidden -> hidden
    h = jnp.dot(h.astype(jnp.bfloat16), w3_ref[...],
                preferred_element_type=jnp.float32) + b3_ref[...]
    h = leaky_relu(h)

    # Layer 4: hidden -> 1, produced directly as a lane-dense (1, tb) row.
    #   (8, hidden) x (tb, hidden)^T -> (8, tb)   [w4 lives in row 0, rows 1-7 zero]
    scores = jax.lax.dot_general(
        w4_ref[...], h.astype(jnp.bfloat16),
        dimension_numbers=(((1,), (1,)), ((), ())),
        preferred_element_type=jnp.float32)
    logits = scores[0:1, :] + b4_ref[0, 0]          # (1, tb)
    o_ref[...] = jax.nn.sigmoid(logits)


def _choose_batch_tile(batch, batch_tile, min_steps):
    """Even split of the batch across grid steps.

    Single step  => tile == batch (block equals full array dims, no padding).
    Multi-step   => tile rounded up to 128 so the (1, tile) output block stays
                    lane-dense / tileable; batch padded to steps * tile.
    """
    num_steps = max(int(min_steps), pl.cdiv(batch, batch_tile))
    if num_steps > 1:
        tb = _round_up(pl.cdiv(batch, num_steps), _LANE)
        num_steps = pl.cdiv(batch, tb)
    if num_steps == 1:
        tb = batch
    return tb, num_steps


def discriminator_forward(x, params, *, batch_tile=1024, min_steps=1):
    """x: (B, input_dim) f32 (or bf16). params: output of prepare_params().

    min_steps=1 is best on single-TensorCore v5e/v6e (one grid step, one
    writeback); on v7x pass min_steps=2 so dimension_semantics=("parallel",)
    can balance the two TensorCores with equal-size steps.
    """
    B, input_dim = x.shape
    hidden4 = params["w1"].shape[1]
    hidden2 = params["w2"].shape[1]
    hidden1 = params["w3"].shape[1]

    tb, num_steps = _choose_batch_tile(B, batch_tile, min_steps)
    b_pad = num_steps * tb
    if b_pad != B:  # never taken in the single-step case (tb == B)
        x = jnp.pad(x, ((0, b_pad - B), (0, 0)))

    def resident(arr):
        # Full-array block with a constant index_map -> DMA'd once, stays
        # resident in VMEM across all grid steps.
        # (pipeline_mode=pl.Buffered(1) would also drop the second buffer;
        #  omitted: the ~33 KB saving is negligible here and double-buffering
        #  is the safer lowering path.)
        return pl.BlockSpec(arr.shape, lambda i: (0, 0))

    # Cost hint for the real math: N=1 final layer, (1, b_pad) f32 output.
    flops = 2 * b_pad * (input_dim * hidden4 + hidden4 * hidden2
                         + hidden2 * hidden1 + hidden1)
    bytes_accessed = (x.size * x.dtype.itemsize
                      + sum(int(v.size) * v.dtype.itemsize for v in params.values())
                      + b_pad * 4)
    cost = pl.CostEstimate(flops=flops, transcendentals=b_pad,
                           bytes_accessed=bytes_accessed)

    out_row = pl.pallas_call(
        discriminator_kernel,
        out_shape=jax.ShapeDtypeStruct((1, b_pad), jnp.float32),
        grid=(num_steps,),
        in_specs=[
            pl.BlockSpec((tb, input_dim), lambda i: (i, 0)),
            resident(params["w1"]), resident(params["b1"]),
            resident(params["w2"]), resident(params["b2"]),
            resident(params["w3"]), resident(params["b3"]),
            resident(params["w4_row"]),
            pl.BlockSpec(memory_space=pltpu.MemorySpace.SMEM),   # b4 scalar
        ],
        out_specs=pl.BlockSpec((1, tb), lambda i: (0, i)),
        compiler_params=pltpu.CompilerParams(
            dimension_semantics=("parallel",),
            vmem_limit_bytes=32 * 1024 * 1024,
        ),
        cost_estimate=cost,
    )(x, params["w1"], params["b1"], params["w2"], params["b2"],
      params["w3"], params["b3"], params["w4_row"], params["b4"])

    # (1, b_pad) row-major is b_pad contiguous values: slice + reshape is cheap.
    return out_row[0, :B][:, None]


def init_params(key, input_dim, hidden_dim):
    """Deterministic synthetic f32 init matching nn.Linear defaults
    (U(-1/sqrt(fan_in), +1/sqrt(fan_in))); weights pre-transposed to (in, out)."""
    dims = [input_dim, hidden_dim * 4, hidden_dim * 2, hidden_dim, 1]
    params = {}
    keys = jax.random.split(key, 8)
    for i in range(4):
        fan_in, fan_out = dims[i], dims[i + 1]
        scale = 1.0 / jnp.sqrt(jnp.float32(fan_in))
        params[f"w{i + 1}"] = jax.random.uniform(
            keys[2 * i], (fan_in, fan_out), minval=-scale, maxval=scale,
            dtype=jnp.float32)
        params[f"b{i + 1}"] = jax.random.uniform(
            keys[2 * i + 1], (1, fan_out), minval=-scale, maxval=scale,
            dtype=jnp.float32)
    return params


def prepare_params(params_f32):
    """One-time kernel-side packing (hoisted out of the forward pass):
    bf16 weights for layers 1-3, layer-4 weight as an 8-sublane-padded
    (8, hidden) bf16 row, layer-4 bias as a (1, 1) f32 SMEM scalar."""
    hidden1 = params_f32["w3"].shape[1]
    p = {}
    for i in range(1, 4):
        p[f"w{i}"] = params_f32[f"w{i}"].astype(jnp.bfloat16)
        p[f"b{i}"] = params_f32[f"b{i}"]
    w4_row = jnp.zeros((_SUBLANE, hidden1), jnp.bfloat16)
    w4_row = w4_row.at[0, :].set(params_f32["w4"][:, 0].astype(jnp.bfloat16))
    p["w4_row"] = w4_row
    p["b4"] = params_f32["b4"].reshape(1, 1).astype(jnp.float32)
    return p


def reference_forward(x, params_f32):
    """Pure-JAX reference mirroring the kernel's bf16-operand / f32-accumulate math."""
    h = x
    for i in range(1, 4):
        h = jnp.dot(h.astype(jnp.bfloat16),
                    params_f32[f"w{i}"].astype(jnp.bfloat16),
                    preferred_element_type=jnp.float32) + params_f32[f"b{i}"]
        h = jnp.where(h > 0, h, _NEG_SLOPE * h)
    logits = jnp.dot(h.astype(jnp.bfloat16),
                     params_f32["w4"].astype(jnp.bfloat16),
                     preferred_element_type=jnp.float32) + params_f32["b4"]
    return jax.nn.sigmoid(logits)


if __name__ == "__main__":
    # B=384 with the default batch_tile -> a single 384-row grid step:
    # no wrapper padding pass, no wasted padded rows, one output writeback.
    batch = 384
    input_dim = 16
    hidden_dim = 32

    key = jax.random.PRNGKey(0)
    kx, kp = jax.random.split(key)
    x = jax.random.normal(kx, (batch, input_dim), dtype=jnp.float32)
    params_f32 = init_params(kp, input_dim, hidden_dim)
    params = prepare_params(params_f32)

    out = discriminator_forward(x, params)
    out = jax.block_until_ready(out)

    ref = reference_forward(x, params_f32)
    assert out.shape == (batch, 1), out.shape
    assert jnp.allclose(out, ref, atol=1e-4, rtol=1e-4), "mismatch vs reference"

    print("KERNEL_OK")
</pallas_src>

<mosaic_0001>
module attributes {stable_mosaic.version = 11 : i64} {
  func.func @discriminator_kernel(%arg0: i32, %arg1: memref<384x16xf32, #tpu.memory_space<vmem>>, %arg2: memref<16x128xbf16, #tpu.memory_space<vmem>>, %arg3: memref<1x128xf32, #tpu.memory_space<vmem>>, %arg4: memref<128x64xbf16, #tpu.memory_space<vmem>>, %arg5: memref<1x64xf32, #tpu.memory_space<vmem>>, %arg6: memref<64x32xbf16, #tpu.memory_space<vmem>>, %arg7: memref<1x32xf32, #tpu.memory_space<vmem>>, %arg8: memref<8x32xbf16, #tpu.memory_space<vmem>>, %arg9: memref<1x1xf32, #tpu.memory_space<smem>>, %arg10: memref<1x384xf32, #tpu.memory_space<vmem>>) attributes {dimension_semantics = [#tpu.dimension_semantics<parallel>], iteration_bounds = array<i64: 1>, scalar_prefetch = 0 : i64, scratch_operands = 0 : i64, tpu.core_type = #tpu.core_type<tc>, window_params = [{transform_indices = @transform_0, window_bounds = array<i64: 384, 16>}, {pipeline_mode = #tpu.pipeline_mode<synchronous>, transform_indices = @transform_1, window_bounds = array<i64: 16, 128>}, {pipeline_mode = #tpu.pipeline_mode<synchronous>, transform_indices = @transform_2, window_bounds = array<i64: 1, 128>}, {pipeline_mode = #tpu.pipeline_mode<synchronous>, transform_indices = @transform_3, window_bounds = array<i64: 128, 64>}, {pipeline_mode = #tpu.pipeline_mode<synchronous>, transform_indices = @transform_4, window_bounds = array<i64: 1, 64>}, {pipeline_mode = #tpu.pipeline_mode<synchronous>, transform_indices = @transform_5, window_bounds = array<i64: 64, 32>}, {pipeline_mode = #tpu.pipeline_mode<synchronous>, transform_indices = @transform_6, window_bounds = array<i64: 1, 32>}, {pipeline_mode = #tpu.pipeline_mode<synchronous>, transform_indices = @transform_7, window_bounds = array<i64: 8, 32>}, {transform_indices = @transform_8, window_bounds = array<i64: 1, 1>}, {transform_indices = @transform_9, window_bounds = array<i64: 1, 384>}]} {
    %c0 = arith.constant 0 : index
    %c0_0 = arith.constant 0 : index
    %0 = vector.load %arg1[%c0, %c0_0] : memref<384x16xf32, #tpu.memory_space<vmem>>, vector<384x16xf32>
    %1 = arith.truncf %0 : vector<384x16xf32> to vector<384x16xbf16>
    %c0_1 = arith.constant 0 : index
    %c0_2 = arith.constant 0 : index
    %2 = vector.load %arg2[%c0_1, %c0_2] : memref<16x128xbf16, #tpu.memory_space<vmem>>, vector<16x128xbf16>
    %cst = arith.constant dense<0.000000e+00> : vector<384x128xf32>
    %3 = tpu.matmul %1, %2, %cst {dimension_numbers = #tpu.dot_dimension_numbers<[1], [0], [0], [1], [0, 0, 1, 1], [], []>} : vector<384x16xbf16>, vector<16x128xbf16>, vector<384x128xf32> -> vector<384x128xf32>
    %c0_3 = arith.constant 0 : index
    %c0_4 = arith.constant 0 : index
    %4 = vector.load %arg3[%c0_3, %c0_4] : memref<1x128xf32, #tpu.memory_space<vmem>>, vector<1x128xf32>
    %5 = vector.broadcast %4 : vector<1x128xf32> to vector<384x128xf32>
    %6 = arith.addf %3, %5 : vector<384x128xf32>
    %cst_5 = arith.constant 0.000000e+00 : f32
    %7 = vector.broadcast %cst_5 : f32 to vector<384x128xf32>
    %8 = arith.cmpf ogt, %6, %7 : vector<384x128xf32>
    %cst_6 = arith.constant 2.000000e-01 : f32
    %9 = vector.broadcast %cst_6 : f32 to vector<384x128xf32>
    %10 = arith.mulf %9, %6 : vector<384x128xf32>
    %11 = arith.select %8, %6, %10 : vector<384x128xi1>, vector<384x128xf32>
    %12 = arith.truncf %11 : vector<384x128xf32> to vector<384x128xbf16>
    %c0_7 = arith.constant 0 : index
    %c0_8 = arith.constant 0 : index
    %13 = vector.load %arg4[%c0_7, %c0_8] : memref<128x64xbf16, #tpu.memory_space<vmem>>, vector<128x64xbf16>
    %cst_9 = arith.constant dense<0.000000e+00> : vector<384x64xf32>
    %14 = tpu.matmul %12, %13, %cst_9 {dimension_numbers = #tpu.dot_dimension_numbers<[1], [0], [0], [1], [0, 0, 1, 1], [], []>} : vector<384x128xbf16>, vector<128x64xbf16>, vector<384x64xf32> -> vector<384x64xf32>
    %c0_10 = arith.constant 0 : index
    %c0_11 = arith.constant 0 : index
    %15 = vector.load %arg5[%c0_10, %c0_11] : memref<1x64xf32, #tpu.memory_space<vmem>>, vector<1x64xf32>
    %16 = vector.broadcast %15 : vector<1x64xf32> to vector<384x64xf32>
    %17 = arith.addf %14, %16 : vector<384x64xf32>
    %cst_12 = arith.constant 0.000000e+00 : f32
    %18 = vector.broadcast %cst_12 : f32 to vector<384x64xf32>
    %19 = arith.cmpf ogt, %17, %18 : vector<384x64xf32>
    %cst_13 = arith.constant 2.000000e-01 : f32
    %20 = vector.broadcast %cst_13 : f32 to vector<384x64xf32>
    %21 = arith.mulf %20, %17 : vector<384x64xf32>
    %22 = arith.select %19, %17, %21 : vector<384x64xi1>, vector<384x64xf32>
    %23 = arith.truncf %22 : vector<384x64xf32> to vector<384x64xbf16>
    %c0_14 = arith.constant 0 : index
    %c0_15 = arith.constant 0 : index
    %24 = vector.load %arg6[%c0_14, %c0_15] : memref<64x32xbf16, #tpu.memory_space<vmem>>, vector<64x32xbf16>
    %cst_16 = arith.constant dense<0.000000e+00> : vector<384x32xf32>
    %25 = tpu.matmul %23, %24, %cst_16 {dimension_numbers = #tpu.dot_dimension_numbers<[1], [0], [0], [1], [0, 0, 1, 1], [], []>} : vector<384x64xbf16>, vector<64x32xbf16>, vector<384x32xf32> -> vector<384x32xf32>
    %c0_17 = arith.constant 0 : index
    %c0_18 = arith.constant 0 : index
    %26 = vector.load %arg7[%c0_17, %c0_18] : memref<1x32xf32, #tpu.memory_space<vmem>>, vector<1x32xf32>
    %27 = vector.broadcast %26 : vector<1x32xf32> to vector<384x32xf32>
    %28 = arith.addf %25, %27 : vector<384x32xf32>
    %cst_19 = arith.constant 0.000000e+00 : f32
    %29 = vector.broadcast %cst_19 : f32 to vector<384x32xf32>
    %30 = arith.cmpf ogt, %28, %29 : vector<384x32xf32>
    %cst_20 = arith.constant 2.000000e-01 : f32
    %31 = vector.broadcast %cst_20 : f32 to vector<384x32xf32>
    %32 = arith.mulf %31, %28 : vector<384x32xf32>
    %33 = arith.select %30, %28, %32 : vector<384x32xi1>, vector<384x32xf32>
    %c0_21 = arith.constant 0 : index
    %c0_22 = arith.constant 0 : index
    %34 = vector.load %arg8[%c0_21, %c0_22] : memref<8x32xbf16, #tpu.memory_space<vmem>>, vector<8x32xbf16>
    %35 = arith.truncf %33 : vector<384x32xf32> to vector<384x32xbf16>
    %cst_23 = arith.constant dense<0.000000e+00> : vector<8x384xf32>
    %36 = tpu.matmul %34, %35, %cst_23 {dimension_numbers = #tpu.dot_dimension_numbers<[1], [1], [0], [0], [0, 0, 1, 0], [], []>} : vector<8x32xbf16>, vector<384x32xbf16>, vector<8x384xf32> -> vector<8x384xf32>
    %37 = vector.extract_strided_slice %36 {offsets = [0, 0], sizes = [1, 384], strides = [1, 1]} : vector<8x384xf32> to vector<1x384xf32>
    %c0_24 = arith.constant 0 : index
    %c0_25 = arith.constant 0 : index
    %38 = memref.load %arg9[%c0_24, %c0_25] : memref<1x1xf32, #tpu.memory_space<smem>>
    %39 = vector.broadcast %38 : f32 to vector<1x384xf32>
    %40 = arith.addf %37, %39 : vector<1x384xf32>
    %41 = arith.negf %40 : vector<1x384xf32>
    %42 = math.exp %41 : vector<1x384xf32>
    %cst_26 = arith.constant 1.000000e+00 : f32
    %43 = vector.broadcast %cst_26 : f32 to vector<1x384xf32>
    %44 = arith.addf %43, %42 : vector<1x384xf32>
    %45 = arith.divf %43, %44 : vector<1x384xf32>
    %c0_27 = arith.constant 0 : index
    %c0_28 = arith.constant 0 : index
    %46 = vector.load %arg10[%c0_27, %c0_28] : memref<1x384xf32, #tpu.memory_space<vmem>>, vector<1x384xf32>
    tpu.vector_store %arg10[%c0_27, %c0_28], %45 {strides = array<i32>} : memref<1x384xf32, #tpu.memory_space<vmem>>, vector<1x384xf32>,
    return
  }
  func.func @transform_0(%arg0: i32) -> (i32, i32) {
    %c0_i32 = arith.constant 0 : i32
    %c0_i32_0 = arith.constant 0 : i32
    return %arg0, %c0_i32 : i32, i32
  }
  func.func @transform_1(%arg0: i32) -> (i32, i32) {
    %c0_i32 = arith.constant 0 : i32
    %c0_i32_0 = arith.constant 0 : i32
    %c0_i32_1 = arith.constant 0 : i32
    return %c0_i32, %c0_i32_0 : i32, i32
  }
  func.func @transform_2(%arg0: i32) -> (i32, i32) {
    %c0_i32 = arith.constant 0 : i32
    %c0_i32_0 = arith.constant 0 : i32
    %c0_i32_1 = arith.constant 0 : i32
    return %c0_i32, %c0_i32_0 : i32, i32
  }
  func.func @transform_3(%arg0: i32) -> (i32, i32) {
    %c0_i32 = arith.constant 0 : i32
    %c0_i32_0 = arith.constant 0 : i32
    %c0_i32_1 = arith.constant 0 : i32
    return %c0_i32, %c0_i32_0 : i32, i32
  }
  func.func @transform_4(%arg0: i32) -> (i32, i32) {
    %c0_i32 = arith.constant 0 : i32
    %c0_i32_0 = arith.constant 0 : i32
    %c0_i32_1 = arith.constant 0 : i32
    return %c0_i32, %c0_i32_0 : i32, i32
  }
  func.func @transform_5(%arg0: i32) -> (i32, i32) {
    %c0_i32 = arith.constant 0 : i32
    %c0_i32_0 = arith.constant 0 : i32
    %c0_i32_1 = arith.constant 0 : i32
    return %c0_i32, %c0_i32_0 : i32, i32
  }
  func.func @transform_6(%arg0: i32) -> (i32, i32) {
    %c0_i32 = arith.constant 0 : i32
    %c0_i32_0 = arith.constant 0 : i32
    %c0_i32_1 = arith.constant 0 : i32
    return %c0_i32, %c0_i32_0 : i32, i32
  }
  func.func @transform_7(%arg0: i32) -> (i32, i32) {
    %c0_i32 = arith.constant 0 : i32
    %c0_i32_0 = arith.constant 0 : i32
    %c0_i32_1 = arith.constant 0 : i32
    return %c0_i32, %c0_i32_0 : i32, i32
  }
  func.func @transform_8(%arg0: i32) -> (i32, i32) {
    %c0_i32 = arith.constant 0 : i32
    %c0_i32_0 = arith.constant 0 : i32
    %c0_i32_1 = arith.constant 0 : i32
    return %c0_i32, %c0_i32_0 : i32, i32
  }
  func.func @transform_9(%arg0: i32) -> (i32, i32) {
    %c0_i32 = arith.constant 0 : i32
    %c0_i32_0 = arith.constant 0 : i32
    return %c0_i32, %arg0 : i32, i32
  }
}

</mosaic_0001>

<bundles_post_ra>
// kernel: tpu_custom_call.1
= control target key start
LH: loop header
LB: loop body
LE: loop exit
PB: predicated region body
PF: predicated region fallthrough
CT: control target
= control target key end

     0   :  { %vm122_vm0 = vcmask 130048   ;;  %s2827_s0 = inlined_call_operand.vmem [shape: f32[384,16], index: 0, kind: input, shape index: {}]   ;;  %s2828_s1 = inlined_call_operand.vmem [shape: bf16[16,128], index: 1, kind: input, shape index: {}]   ;;  %s2829_s2 = inlined_call_operand.vmem [shape: f32[1,128], index: 2, kind: input, shape index: {}]   ;;  %s2830_s3 = inlined_call_operand.vmem [shape: bf16[128,64], index: 3, kind: input, shape index: {}]   ;;  %s2831_s4 = inlined_call_operand.vmem [shape: f32[1,64], index: 4, kind: input, shape index: {}]   ;;  %s2832_s5 = inlined_call_operand.vmem [shape: bf16[64,32], index: 5, kind: input, shape index: {}]   ;;  %s2833_s6 = inlined_call_operand.vmem [shape: f32[1,32], index: 6, kind: input, shape index: {}]   ;;  %s2834_s7 = inlined_call_operand.vmem [shape: bf16[8,32], index: 7, kind: input, shape index: {}]   ;;  %s2835_s8 = inlined_call_operand.<no memory space> [shape: f32[1,1], index: 8, kind: input, shape index: {}]   ;;  %s2836_s9 = inlined_call_operand.hbm [shape: f32[1,384], index: 9, kind: output, shape index: {}]  }
   0x1   :  { %v2167_v0 = vld [vmem:[%s2828_s1] sm:$0xff]   ;;  %v36_v2 = vld [vmem:[%s2827_s0 + $0x8] sm:$0xff]  ;;  %v37_v3 = vld [vmem:[%s2827_s0 + $0x10] sm:$0xff] }
   0x2   :  { %v35_v1 = vld [vmem:[%s2827_s0] sm:$0xff]  ;;  %1965 = vmatprep.subr.bf16.mxu0 %v2167_v0  ;;  %v38_v5 = vld [vmem:[%s2827_s0 + $0x18] sm:$0xff]  ;;  %v40_v7 = vld [vmem:[%s2827_s0 + $0x28] sm:$0xff] }
   0x3   :  { %v83_v4 = vpack.c.bf16 %v36_v2, %v35_v1  ;;  %v39_v6 = vld [vmem:[%s2827_s0 + $0x20] sm:$0xff]  ;;  %1966 = vmatpush3.bf16.msra.mxu0 %v2167_v0  ;;  %v84_v8 = vpack.c.bf16 %v38_v5, %v37_v3  ;;  %v41_v10 = vld [vmem:[%s2827_s0 + $0x30] sm:$0xff]  ;;  %v42_v11 = vld [vmem:[%s2827_s0 + $0x38] sm:$0xff] }
   0x4   :  { %v85_v9 = vpack.c.bf16 %v40_v7, %v39_v6  ;;  %v43_v12 = vld [vmem:[%s2827_s0 + $0x40] sm:$0xff]  ;;  %v44_v13 = vld [vmem:[%s2827_s0 + $0x48] sm:$0xff]  ;;  %v86_v14 = vpack.c.bf16 %v42_v11, %v41_v10  ;;  %v45_v16 = vld [vmem:[%s2827_s0 + $0x50] sm:$0xff] }
   0x5   :  { %1967 = vmatprep.mubr.msk.bf16.mxu0 %vm122_vm0, %v83_v4  ;;  %v87_v15 = vpack.c.bf16 %v44_v13, %v43_v12  ;;  %v46_v17 = vld [vmem:[%s2827_s0 + $0x58] sm:$0xff]  ;;  %v47_v18 = vld [vmem:[%s2827_s0 + $0x60] sm:$0xff]  ;;  %v48_v19 = vld [vmem:[%s2827_s0 + $0x68] sm:$0xff] }
   0x6   :  { %1968 = vmatmul.mubr.msk.bf16.vlgmr.msra.gmra.mxu0 %vm122_vm0, %v84_v8  ;;  %v2168_v20 = vld [vmem:[%s2830_s3 + $0x38] sm:$0xff]   ;;  %v88_v21 = vpack.c.bf16 %v46_v17, %v45_v16  ;;  %v2169_v22 = vld [vmem:[%s2830_s3 + $0x30] sm:$0xff]   ;;  %v89_v23 = vpack.c.bf16 %v48_v19, %v47_v18  ;;  %v2170_v26 = vld [vmem:[%s2830_s3 + $0x28] sm:$0xff]  }
   0x7   :  { %1971 = vmatprep.mubr.msk.bf16.mxu0 %vm122_vm0, %v85_v9  ;;  %2015 = vmatprep.subr.bf16.mxu1 %v2168_v20  ;;  %v49_v24 = vld [vmem:[%s2827_s0 + $0x70] sm:$0xff]  ;;  %v50_v25 = vld [vmem:[%s2827_s0 + $0x78] sm:$0xff]  ;;  %v51_v27 = vld [vmem:[%s2827_s0 + $0x80] sm:$0xff] }
   0x8   :  { %2016 = vmatpush3.bf16.msra.mxu1 %v2168_v20  ;;  %v52_v28 = vld [vmem:[%s2827_s0 + $0x88] sm:$0xff]  ;;  %v2171_v29 = vld [vmem:[%s2830_s3 + $0x20] sm:$0xff]   ;;  %v90_v30 = vpack.c.bf16 %v50_v25, %v49_v24 }
   0x9   :  { %2017 = vmatprep.subr.bf16.mxu1 %v2169_v22 }
   0xc   :  { %2018 = vmatpush3.bf16.msra.mxu1 %v2169_v22 }
   0xd   :  { %2019 = vmatprep.subr.bf16.mxu1 %v2170_v26 }
   0xe   :  { %1972 = vmatmul.mubr.msk.bf16.gmra.mxu0 %vm122_vm0, %v86_v14 }
   0xf   :  { %1975 = vmatprep.mubr.msk.bf16.mxu0 %vm122_vm0, %v87_v15 }
  0x16   :  { %1976 = vmatmul.mubr.msk.bf16.gmra.mxu0 %vm122_vm0, %v88_v21 }
  0x17   :  { %1979 = vmatprep.mubr.msk.bf16.mxu0 %vm122_vm0, %v89_v23 }
  0x18   :  { %15 = vsyncpa [#allocation4], 0  ;;  %v91_v31 = vpack.c.bf16 %v52_v28, %v51_v27  ;;  %2020 = vmatpush3.bf16.msra.mxu1 %v2170_v26  ;;  %v2172_v32 = vld [vmem:[%s2830_s3 + $0x18] sm:$0xff]   ;;  %v53_v33 = vld [vmem:[%s2827_s0 + $0x90] sm:$0xff] }
  0x19   :  { %2021 = vmatprep.subr.bf16.mxu1 %v2171_v29  ;;  %v54_v34 = vld [vmem:[%s2827_s0 + $0x98] sm:$0xff]  ;;  %v55_v35 = vld [vmem:[%s2827_s0 + $0xa0] sm:$0xff]  ;;  %v56_v36 = vld [vmem:[%s2827_s0 + $0xa8] sm:$0xff] }
  0x1a   :  { %v92_v37 = vpack.c.bf16 %v54_v34, %v53_v33  ;;  %v93_v38 = vpack.c.bf16 %v56_v36, %v55_v35  ;;  %v57_v39 = vld [vmem:[%s2827_s0 + $0xb0] sm:$0xff]  ;;  %v58_v40 = vld [vmem:[%s2827_s0 + $0xb8] sm:$0xff]  ;;  %v59_v41 = vld [vmem:[%s2827_s0 + $0xc0] sm:$0xff] }
  0x1b   :  { %v60_v42 = vld [vmem:[%s2827_s0 + $0xc8] sm:$0xff]  ;;  %v94_v43 = vpack.c.bf16 %v58_v40, %v57_v39  ;;  %v61_v45 = vld [vmem:[%s2827_s0 + $0xd0] sm:$0xff]  ;;  %v62_v46 = vld [vmem:[%s2827_s0 + $0xd8] sm:$0xff] }
  0x1c   :  { %2022 = vmatpush3.bf16.msra.mxu1 %v2171_v29  ;;  %v95_v44 = vpack.c.bf16 %v60_v42, %v59_v41  ;;  %v63_v47 = vld [vmem:[%s2827_s0 + $0xe0] sm:$0xff]  ;;  %v64_v48 = vld [vmem:[%s2827_s0 + $0xe8] sm:$0xff]  ;;  %v96_v49 = vpack.c.bf16 %v62_v46, %v61_v45  ;;  %v65_v51 = vld [vmem:[%s2827_s0 + $0xf0] sm:$0xff] }
  0x1d   :  { %2023 = vmatprep.subr.bf16.mxu1 %v2172_v32  ;;  %v97_v50 = vpack.c.bf16 %v64_v48, %v63_v47  ;;  %v66_v52 = vld [vmem:[%s2827_s0 + $0xf8] sm:$0xff]  ;;  %v67_v53 = vld [vmem:[%s2827_s0 + $0x100] sm:$0xff]  ;;  %v68_v54 = vld [vmem:[%s2827_s0 + $0x108] sm:$0xff] }
  0x1e   :  { %1980 = vmatmul.mubr.msk.bf16.gmra.mxu0 %vm122_vm0, %v90_v30  ;;  %v98_v55 = vpack.c.bf16 %v66_v52, %v65_v51  ;;  %v99_v56 = vpack.c.bf16 %v68_v54, %v67_v53  ;;  %v69_v57 = vld [vmem:[%s2827_s0 + $0x110] sm:$0xff]  ;;  %v70_v58 = vld [vmem:[%s2827_s0 + $0x118] sm:$0xff]  ;;  %v71_v59 = vld [vmem:[%s2827_s0 + $0x120] sm:$0xff] }
  0x1f   :  { %1983 = vmatprep.mubr.msk.bf16.mxu0 %vm122_vm0, %v91_v31  ;;  %v72_v60 = vld [vmem:[%s2827_s0 + $0x128] sm:$0xff]  ;;  %v100_v61 = vpack.c.bf16 %v70_v58, %v69_v57  ;;  %v73_v63 = vld [vmem:[%s2827_s0 + $0x130] sm:$0xff]  ;;  %v74_v0 = vld [vmem:[%s2827_s0 + $0x138] sm:$0xff] }
  0x20   :  { %2024 = vmatpush3.bf16.msra.mxu1 %v2172_v32  ;;  %v101_v62 = vpack.c.bf16 %v72_v60, %v71_v59  ;;  %v2173_v1 = vld [vmem:[%s2830_s3 + $0x10] sm:$0xff]   ;;  %v75_v2 = vld [vmem:[%s2827_s0 + $0x140] sm:$0xff]  ;;  %v76_v3 = vld [vmem:[%s2827_s0 + $0x148] sm:$0xff]  ;;  %v102_v4 = vpack.c.bf16 %v74_v0, %v73_v63 }
  0x21   :  { %2025 = vmatprep.subr.bf16.mxu1 %v2173_v1  ;;  %v103_v5 = vpack.c.bf16 %v76_v3, %v75_v2  ;;  %v2174_v6 = vld [vmem:[%s2830_s3 + $0x8] sm:$0xff]   ;;  %v77_v7 = vld [vmem:[%s2827_s0 + $0x150] sm:$0xff]  ;;  %v78_v8 = vld [vmem:[%s2827_s0 + $0x158] sm:$0xff] }
  0x22   :  { %v2175_v9 = vld [vmem:[%s2830_s3] sm:$0xff]   ;;  %v80_v11 = vld [vmem:[%s2827_s0 + $0x168] sm:$0xff]  ;;  %v104_v12 = vpack.c.bf16 %v78_v8, %v77_v7  ;;  %v81_v14 = vld [vmem:[%s2827_s0 + $0x170] sm:$0xff] }
  0x23   :  { %v79_v10 = vld [vmem:[%s2827_s0 + $0x160] sm:$0xff]  ;;  %v82_v15 = vld [vmem:[%s2827_s0 + $0x178] sm:$0xff]  ;;  %v2177_v18 = vld [vmem:[%s2832_s5 + $0x10] sm:$0xff]  }
  0x24   :  { %2026 = vmatpush3.bf16.msra.mxu1 %v2173_v1  ;;  %v105_v13 = vpack.c.bf16 %v80_v11, %v79_v10  ;;  %v106_v16 = vpack.c.bf16 %v82_v15, %v81_v14  ;;  %v2176_v17 = vld [vmem:[%s2832_s5 + $0x18] sm:$0xff]   ;;  %v2178_v19 = vld [vmem:[%s2832_s5 + $0x8] sm:$0xff]   ;;  %v2475_v21 = vld [vmem:[%s2829_s2] ss:$0 sm:$0xff] }
  0x25   :  { %2027 = vmatprep.subr.bf16.mxu1 %v2174_v6  ;;  %2079 = vmatprep.subr.bf16.mxu0 %v2176_v17 }
  0x26   :  { %1984 = vmatmul.mubr.msk.bf16.gmra.mxu0 %vm122_vm0, %v92_v37 }
  0x27   :  { %1987 = vmatprep.mubr.msk.bf16.mxu0 %vm122_vm0, %v93_v38  ;;  %2080 = vmatpush3.bf16.msra.mxu0 %v2176_v17 }
  0x28   :  { %2028 = vmatpush3.bf16.msra.mxu1 %v2174_v6  ;;  %2081 = vmatprep.subr.bf16.mxu0 %v2177_v18 }
  0x29   :  { %2029 = vmatprep.subr.bf16.mxu1 %v2175_v9 }
  0x2b   :  { %2082 = vmatpush3.bf16.msra.mxu0 %v2177_v18 }
  0x2c   :  { %2030 = vmatpush3.bf16.msra.mxu1 %v2175_v9  ;;  %2083 = vmatprep.subr.bf16.mxu0 %v2178_v19 }
  0x2e   :  { %1988 = vmatmul.mubr.msk.bf16.gmra.mxu0 %vm122_vm0, %v94_v43 }
  0x2f   :  { %1991 = vmatprep.mubr.msk.bf16.mxu0 %vm122_vm0, %v95_v44  ;;  %2084 = vmatpush3.bf16.msra.mxu0 %v2178_v19 }
  0x36   :  { %1992 = vmatmul.mubr.msk.bf16.gmra.mxu0 %vm122_vm0, %v96_v49 }
  0x37   :  { %1995 = vmatprep.mubr.msk.bf16.mxu0 %vm122_vm0, %v97_v50 }
  0x3e   :  { %1996 = vmatmul.mubr.msk.bf16.gmra.mxu0 %vm122_vm0, %v98_v55 }
  0x3f   :  { %1999 = vmatprep.mubr.msk.bf16.mxu0 %vm122_vm0, %v99_v56 }
  0x46   :  { %2000 = vmatmul.mubr.msk.bf16.gmra.mxu0 %vm122_vm0, %v100_v61 }
  0x47   :  { %2003 = vmatprep.mubr.msk.bf16.mxu0 %vm122_vm0, %v101_v62 }
  0x4e   :  { %2004 = vmatmul.mubr.msk.bf16.gmra.mxu0 %vm122_vm0, %v102_v4 }
  0x4f   :  { %2007 = vmatprep.mubr.msk.bf16.mxu0 %vm122_vm0, %v103_v5 }
  0x56   :  { %2008 = vmatmul.mubr.msk.bf16.gmra.mxu0 %vm122_vm0, %v104_v12 }
  0x57   :  { %2011 = vmatprep.mubr.msk.bf16.mxu0 %vm122_vm0, %v105_v13 }
  0x5e   :  { %2012 = vmatmul.mubr.msk.bf16.gmra.mxu0 %vm122_vm0, %v106_v16 }
  0xc6   :  { %v1969_v20 = vpop.f32.mrf.mxu0 }
  0xc7   :  { %v238_v24 = vadd.f32 %v1969_v20, %v2475_v21 }
  0xc8   :  { %v229_v22 = vpop.f32.mrf.mxu0 }
  0xc9   :  { %v230_v23 = vadd.f32 %v2475_v21, %v229_v22  ;;  %v470_v31 = vmul.f32 0.2, %v238_v24  ;;  %vm422_vm3 = vcmp.gt.f32.partialorder %v238_v24, 0.0 }
  0xca   :  { %v1970_v25 = vpop.f32.mrf.mxu0 }
  0xcb   :  { %v241_v26 = vadd.f32 %v1970_v25, %v2475_v21  ;;  %v468_v28 = vmul.f32 0.2, %v230_v23  ;;  %vm420_vm2 = vcmp.gt.f32.partialorder %v230_v23, 0.0  ;;  %v518_v42 = vsel %vm422_vm3, %v238_v24, %v470_v31 }
  0xcc   :  { %v232_v27 = vpop.f32.mrf.mxu0 }
  0xcd   :  { %vm423_vm1 = vcmp.gt.f32.partialorder %v241_v26, 0.0  ;;  %v471_v29 = vmul.f32 0.2, %v241_v26  ;;  %v233_v30 = vadd.f32 %v2475_v21, %v232_v27  ;;  %v516_v37 = vsel %vm420_vm2, %v230_v23, %v468_v28 }
  0xce   :  { %v1973_v32 = vpop.f32.mrf.mxu0 }
  0xcf   :  { %v469_v33 = vmul.f32 0.2, %v233_v30  ;;  %vm421_vm4 = vcmp.gt.f32.partialorder %v233_v30, 0.0  ;;  %v519_v35 = vsel %vm423_vm1, %v241_v26, %v471_v29  ;;  %v254_v39 = vadd.f32 %v1973_v32, %v2475_v21 }
  0xd0   :  { %v245_v34 = vpop.f32.mrf.mxu0  ;;  %v565_v44 = vpack.c.bf16 %v519_v35, %v518_v42 }
  0xd1   :  { %v246_v36 = vadd.f32 %v2475_v21, %v245_v34  ;;  %v517_v38 = vsel %vm421_vm4, %v233_v30, %v469_v33  ;;  %v474_v49 = vmul.f32 0.2, %v254_v39  ;;  %vm426_vm7 = vcmp.gt.f32.partialorder %v254_v39, 0.0 }
  0xd2   :  { %v1974_v40 = vpop.f32.mrf.mxu0  ;;  %v564_v41 = vpack.c.bf16 %v517_v38, %v516_v37 }
  0xd3   :  { %v257_v43 = vadd.f32 %v1974_v40, %v2475_v21  ;;  %v472_v46 = vmul.f32 0.2, %v246_v36  ;;  %vm424_vm6 = vcmp.gt.f32.partialorder %v246_v36, 0.0  ;;  %v522_v60 = vsel %vm426_vm7, %v254_v39, %v474_v49 }
  0xd4   :  { %v248_v45 = vpop.f32.mrf.mxu0  ;;  %2031 = vmatprep.mubr.bf16.mxu1 %v564_v41 }
  0xd5   :  { %vm427_vm5 = vcmp.gt.f32.partialorder %v257_v43, 0.0  ;;  %v475_v47 = vmul.f32 0.2, %v257_v43  ;;  %v249_v48 = vadd.f32 %v2475_v21, %v248_v45  ;;  %2032 = vmatmul.mubr.bf16.vlgmr.msra.gmra.mxu1 %v565_v44  ;;  %v520_v55 = vsel %vm424_vm6, %v246_v36, %v472_v46 }
  0xd6   :  { %v1977_v50 = vpop.f32.mrf.mxu0 }
  0xd7   :  { %vm425_vm8 = vcmp.gt.f32.partialorder %v249_v48, 0.0  ;;  %v473_v51 = vmul.f32 0.2, %v249_v48  ;;  %v523_v53 = vsel %vm427_vm5, %v257_v43, %v475_v47  ;;  %v270_v57 = vadd.f32 %v1977_v50, %v2475_v21 }
  0xd8   :  { %v261_v52 = vpop.f32.mrf.mxu0  ;;  %v567_v62 = vpack.c.bf16 %v523_v53, %v522_v60 }
  0xd9   :  { %v262_v54 = vadd.f32 %v2475_v21, %v261_v52  ;;  %v521_v56 = vsel %vm425_vm8, %v249_v48, %v473_v51  ;;  %v478_v3 = vmul.f32 0.2, %v270_v57  ;;  %vm430_vm11 = vcmp.gt.f32.partialorder %v270_v57, 0.0 }
  0xda   :  { %v1978_v58 = vpop.f32.mrf.mxu0  ;;  %v566_v59 = vpack.c.bf16 %v521_v56, %v520_v55 }
  0xdb   :  { %v273_v61 = vadd.f32 %v1978_v58, %v2475_v21  ;;  %v476_v0 = vmul.f32 0.2, %v262_v54  ;;  %vm428_vm10 = vcmp.gt.f32.partialorder %v262_v54, 0.0  ;;  %v526_v14 = vsel %vm430_vm11, %v270_v57, %v478_v3 }
  0xdc   :  { %v264_v63 = vpop.f32.mrf.mxu0  ;;  %2035 = vmatprep.mubr.bf16.mxu1 %v566_v59 }
  0xdd   :  { %vm431_vm9 = vcmp.gt.f32.partialorder %v273_v61, 0.0  ;;  %v479_v1 = vmul.f32 0.2, %v273_v61  ;;  %v265_v2 = vadd.f32 %v2475_v21, %v264_v63  ;;  %2036 = vmatmul.mubr.bf16.gmra.mxu1 %v567_v62  ;;  %v524_v9 = vsel %vm428_vm10, %v262_v54, %v476_v0 }
  0xde   :  { %v1981_v4 = vpop.f32.mrf.mxu0 }
  0xdf   :  { %vm429_vm12 = vcmp.gt.f32.partialorder %v265_v2, 0.0  ;;  %v477_v5 = vmul.f32 0.2, %v265_v2  ;;  %v527_v7 = vsel %vm431_vm9, %v273_v61, %v479_v1  ;;  %v286_v11 = vadd.f32 %v1981_v4, %v2475_v21 }
  0xe0   :  { %v277_v6 = vpop.f32.mrf.mxu0  ;;  %v569_v16 = vpack.c.bf16 %v527_v7, %v526_v14 }
  0xe1   :  { %v278_v8 = vadd.f32 %v2475_v21, %v277_v6  ;;  %v525_v10 = vsel %vm429_vm12, %v265_v2, %v477_v5  ;;  %v482_v22 = vmul.f32 0.2, %v286_v11  ;;  %vm434_vm15 = vcmp.gt.f32.partialorder %v286_v11, 0.0 }
  0xe2   :  { %v1982_v12 = vpop.f32.mrf.mxu0  ;;  %v568_v13 = vpack.c.bf16 %v525_v10, %v524_v9 }
  0xe3   :  { %v289_v15 = vadd.f32 %v1982_v12, %v2475_v21  ;;  %v480_v18 = vmul.f32 0.2, %v278_v8  ;;  %vm432_vm14 = vcmp.gt.f32.partialorder %v278_v8, 0.0  ;;  %v530_v33 = vsel %vm434_vm15, %v286_v11, %v482_v22 }
  0xe4   :  { %v280_v17 = vpop.f32.mrf.mxu0  ;;  %2039 = vmatprep.mubr.bf16.mxu1 %v568_v13 }
  0xe5   :  { %vm435_vm13 = vcmp.gt.f32.partialorder %v289_v15, 0.0  ;;  %v483_v19 = vmul.f32 0.2, %v289_v15  ;;  %v281_v20 = vadd.f32 %v2475_v21, %v280_v17  ;;  %2040 = vmatmul.mubr.bf16.gmra.mxu1 %v569_v16  ;;  %v528_v28 = vsel %vm432_vm14, %v278_v8, %v480_v18 }
  0xe6   :  { %v1985_v23 = vpop.f32.mrf.mxu0 }
  0xe7   :  { %vm433_vm0 = vcmp.gt.f32.partialorder %v281_v20, 0.0  ;;  %v481_v24 = vmul.f32 0.2, %v281_v20  ;;  %v531_v26 = vsel %vm435_vm13, %v289_v15, %v483_v19  ;;  %v302_v30 = vadd.f32 %v1985_v23, %v2475_v21 }
  0xe8   :  { %v293_v25 = vpop.f32.mrf.mxu0  ;;  %v571_v35 = vpack.c.bf16 %v531_v26, %v530_v33 }
  0xe9   :  { %v294_v27 = vadd.f32 %v2475_v21, %v293_v25  ;;  %v529_v29 = vsel %vm433_vm0, %v281_v20, %v481_v24  ;;  %v486_v40 = vmul.f32 0.2, %v302_v30  ;;  %vm438_vm3 = vcmp.gt.f32.partialorder %v302_v30, 0.0 }
  0xea   :  { %v1986_v31 = vpop.f32.mrf.mxu0  ;;  %v570_v32 = vpack.c.bf16 %v529_v29, %v528_v28 }
  0xeb   :  { %v305_v34 = vadd.f32 %v1986_v31, %v2475_v21  ;;  %v484_v37 = vmul.f32 0.2, %v294_v27  ;;  %vm436_vm2 = vcmp.gt.f32.partialorder %v294_v27, 0.0  ;;  %v534_v51 = vsel %vm438_vm3, %v302_v30, %v486_v40 }
  0xec   :  { %v296_v36 = vpop.f32.mrf.mxu0  ;;  %2043 = vmatprep.mubr.bf16.mxu1 %v570_v32 }
  0xed   :  { %vm439_vm1 = vcmp.gt.f32.partialorder %v305_v34, 0.0  ;;  %v487_v38 = vmul.f32 0.2, %v305_v34  ;;  %v297_v39 = vadd.f32 %v2475_v21, %v296_v36  ;;  %2044 = vmatmul.mubr.bf16.gmra.mxu1 %v571_v35  ;;  %v532_v46 = vsel %vm436_vm2, %v294_v27, %v484_v37 }
  0xee   :  { %v1989_v41 = vpop.f32.mrf.mxu0 }
  0xef   :  { %vm437_vm4 = vcmp.gt.f32.partialorder %v297_v39, 0.0  ;;  %v485_v42 = vmul.f32 0.2, %v297_v39  ;;  %v535_v44 = vsel %vm439_vm1, %v305_v34, %v487_v38  ;;  %v318_v48 = vadd.f32 %v1989_v41, %v2475_v21 }
  0xf0   :  { %v309_v43 = vpop.f32.mrf.mxu0  ;;  %v573_v53 = vpack.c.bf16 %v535_v44, %v534_v51 }
  0xf1   :  { %v310_v45 = vadd.f32 %v2475_v21, %v309_v43  ;;  %v533_v47 = vsel %vm437_vm4, %v297_v39, %v485_v42  ;;  %v490_v58 = vmul.f32 0.2, %v318_v48  ;;  %vm442_vm7 = vcmp.gt.f32.partialorder %v318_v48, 0.0 }
  0xf2   :  { %v1990_v49 = vpop.f32.mrf.mxu0  ;;  %v572_v50 = vpack.c.bf16 %v533_v47, %v532_v46 }
  0xf3   :  { %v321_v52 = vadd.f32 %v1990_v49, %v2475_v21  ;;  %v488_v55 = vmul.f32 0.2, %v310_v45  ;;  %vm440_vm6 = vcmp.gt.f32.partialorder %v310_v45, 0.0  ;;  %v538_v5 = vsel %vm442_vm7, %v318_v48, %v490_v58 }
  0xf4   :  { %v312_v54 = vpop.f32.mrf.mxu0  ;;  %2047 = vmatprep.mubr.bf16.mxu1 %v572_v50 }
  0xf5   :  { %vm443_vm5 = vcmp.gt.f32.partialorder %v321_v52, 0.0  ;;  %v491_v56 = vmul.f32 0.2, %v321_v52  ;;  %v313_v57 = vadd.f32 %v2475_v21, %v312_v54  ;;  %2048 = vmatmul.mubr.bf16.gmra.mxu1 %v573_v53  ;;  %v536_v0 = vsel %vm440_vm6, %v310_v45, %v488_v55 }
  0xf6   :  { %v1993_v59 = vpop.f32.mrf.mxu0 }
  0xf7   :  { %vm441_vm8 = vcmp.gt.f32.partialorder %v313_v57, 0.0  ;;  %v489_v60 = vmul.f32 0.2, %v313_v57  ;;  %v539_v62 = vsel %vm443_vm5, %v321_v52, %v491_v56  ;;  %v334_v2 = vadd.f32 %v1993_v59, %v2475_v21 }
  0xf8   :  { %v325_v61 = vpop.f32.mrf.mxu0  ;;  %v575_v7 = vpack.c.bf16 %v539_v62, %v538_v5 }
  0xf9   :  { %v326_v63 = vadd.f32 %v2475_v21, %v325_v61  ;;  %v537_v1 = vsel %vm441_vm8, %v313_v57, %v489_v60  ;;  %v494_v12 = vmul.f32 0.2, %v334_v2  ;;  %vm446_vm11 = vcmp.gt.f32.partialorder %v334_v2, 0.0 }
  0xfa   :  { %v1994_v3 = vpop.f32.mrf.mxu0  ;;  %v574_v4 = vpack.c.bf16 %v537_v1, %v536_v0 }
  0xfb   :  { %v337_v6 = vadd.f32 %v1994_v3, %v2475_v21  ;;  %v492_v9 = vmul.f32 0.2, %v326_v63  ;;  %vm444_vm10 = vcmp.gt.f32.partialorder %v326_v63, 0.0  ;;  %v542_v24 = vsel %vm446_vm11, %v334_v2, %v494_v12 }
  0xfc   :  { %v328_v8 = vpop.f32.mrf.mxu0  ;;  %2051 = vmatprep.mubr.bf16.mxu1 %v574_v4 }
  0xfd   :  { %vm447_vm9 = vcmp.gt.f32.partialorder %v337_v6, 0.0  ;;  %v495_v10 = vmul.f32 0.2, %v337_v6  ;;  %v329_v11 = vadd.f32 %v2475_v21, %v328_v8  ;;  %2052 = vmatmul.mubr.bf16.gmra.mxu1 %v575_v7  ;;  %v540_v19 = vsel %vm444_vm10, %v326_v63, %v492_v9 }
  0xfe   :  { %v1997_v13 = vpop.f32.mrf.mxu0 }
  0xff   :  { %vm445_vm12 = vcmp.gt.f32.partialorder %v329_v11, 0.0  ;;  %v493_v14 = vmul.f32 0.2, %v329_v11  ;;  %v350_v15 = vadd.f32 %v1997_v13, %v2475_v21  ;;  %v543_v17 = vsel %vm447_vm9, %v337_v6, %v495_v10 }
 0x100   :  { %v341_v16 = vpop.f32.mrf.mxu0  ;;  %v577_v26 = vpack.c.bf16 %v543_v17, %v542_v24 }
 0x101   :  { %v342_v18 = vadd.f32 %v2475_v21, %v341_v16  ;;  %v541_v20 = vsel %vm445_vm12, %v329_v11, %v493_v14  ;;  %v498_v27 = vmul.f32 0.2, %v350_v15  ;;  %vm450_vm14 = vcmp.gt.f32.partialorder %v350_v15, 0.0 }
 0x102   :  { %v1998_v22 = vpop.f32.mrf.mxu0  ;;  %v576_v23 = vpack.c.bf16 %v541_v20, %v540_v19 }
 0x103   :  { %v353_v25 = vadd.f32 %v1998_v22, %v2475_v21  ;;  %v496_v29 = vmul.f32 0.2, %v342_v18  ;;  %vm448_vm15 = vcmp.gt.f32.partialorder %v342_v18, 0.0  ;;  %v546_v39 = vsel %vm450_vm14, %v350_v15, %v498_v27 }
 0x104   :  { %v344_v28 = vpop.f32.mrf.mxu0  ;;  %2055 = vmatprep.mubr.bf16.mxu1 %v576_v23 }
 0x105   :  { %vm451_vm13 = vcmp.gt.f32.partialorder %v353_v25, 0.0  ;;  %v499_v30 = vmul.f32 0.2, %v353_v25  ;;  %v345_v31 = vadd.f32 %v2475_v21, %v344_v28  ;;  %2056 = vmatmul.mubr.bf16.gmra.mxu1 %v577_v26  ;;  %v544_v37 = vsel %vm448_vm15, %v342_v18, %v496_v29  ;;  %v2179_v26 = vld [vmem:[%s2832_s5] sm:$0xff]  }
 0x106   :  { %v2001_v32 = vpop.f32.mrf.mxu0  ;;  %2085 = vmatprep.subr.bf16.mxu0 %v2179_v26 }
 0x107   :  { %vm449_vm0 = vcmp.gt.f32.partialorder %v345_v31, 0.0  ;;  %v497_v33 = vmul.f32 0.2, %v345_v31  ;;  %v547_v34 = vsel %vm451_vm13, %v353_v25, %v499_v30  ;;  %v366_v35 = vadd.f32 %v2001_v32, %v2475_v21  ;;  %2086 = vmatpush3.bf16.msra.mxu0 %v2179_v26 }
 0x108   :  { %v357_v36 = vpop.f32.mrf.mxu0  ;;  %v579_v42 = vpack.c.bf16 %v547_v34, %v546_v39 }
 0x109   :  { %v545_v38 = vsel %vm449_vm0, %v345_v31, %v497_v33  ;;  %v358_v40 = vadd.f32 %v2475_v21, %v357_v36  ;;  %v502_v43 = vmul.f32 0.2, %v366_v35  ;;  %vm454_vm1 = vcmp.gt.f32.partialorder %v366_v35, 0.0 }
 0x10a   :  { %v578_v41 = vpack.c.bf16 %v545_v38, %v544_v37  ;;  %v2002_v44 = vpop.f32.mrf.mxu0 }
 0x10b   :  { %vm452_vm2 = vcmp.gt.f32.partialorder %v358_v40, 0.0  ;;  %v500_v45 = vmul.f32 0.2, %v358_v40  ;;  %v369_v46 = vadd.f32 %v2002_v44, %v2475_v21  ;;  %v550_v52 = vsel %vm454_vm1, %v366_v35, %v502_v43 }
 0x10c   :  { %2059 = vmatprep.mubr.bf16.mxu1 %v578_v41  ;;  %v360_v47 = vpop.f32.mrf.mxu0 }
 0x10d   :  { %2060 = vmatmul.mubr.bf16.gmra.mxu1 %v579_v42  ;;  %vm455_vm3 = vcmp.gt.f32.partialorder %v369_v46, 0.0  ;;  %v503_v48 = vmul.f32 0.2, %v369_v46  ;;  %v361_v49 = vadd.f32 %v2475_v21, %v360_v47  ;;  %v548_v51 = vsel %vm452_vm2, %v358_v40, %v500_v45 }
 0x10e   :  { %v2005_v50 = vpop.f32.mrf.mxu0 }
 0x10f   :  { %vm453_vm4 = vcmp.gt.f32.partialorder %v361_v49, 0.0  ;;  %v501_v53 = vmul.f32 0.2, %v361_v49  ;;  %v382_v54 = vadd.f32 %v2005_v50, %v2475_v21  ;;  %v551_v55 = vsel %vm455_vm3, %v369_v46, %v503_v48  ;;  %v2531_v50 = vld [vmem:[%s2831_s4] ss:$0 sm:$0xff] }
 0x110   :  { %v373_v56 = vpop.f32.mrf.mxu0  ;;  %v581_v59 = vpack.c.bf16 %v551_v55, %v550_v52 }
 0x111   :  { %v374_v57 = vadd.f32 %v2475_v21, %v373_v56  ;;  %v549_v58 = vsel %vm453_vm4, %v361_v49, %v501_v53  ;;  %v506_v60 = vmul.f32 0.2, %v382_v54  ;;  %vm458_vm5 = vcmp.gt.f32.partialorder %v382_v54, 0.0 }
 0x112   :  { %v2006_v61 = vpop.f32.mrf.mxu0  ;;  %v580_v62 = vpack.c.bf16 %v549_v58, %v548_v51 }
 0x113   :  { %vm456_vm6 = vcmp.gt.f32.partialorder %v374_v57, 0.0  ;;  %v504_v63 = vmul.f32 0.2, %v374_v57  ;;  %v385_v0 = vadd.f32 %v2006_v61, %v2475_v21  ;;  %v554_v6 = vsel %vm458_vm5, %v382_v54, %v506_v60 }
 0x114   :  { %v376_v1 = vpop.f32.mrf.mxu0  ;;  %2063 = vmatprep.mubr.bf16.mxu1 %v580_v62  ;;  %vm1091_vm5 = vcmask 523264  }
 0x115   :  { %vm459_vm7 = vcmp.gt.f32.partialorder %v385_v0, 0.0  ;;  %v507_v2 = vmul.f32 0.2, %v385_v0  ;;  %v377_v3 = vadd.f32 %v2475_v21, %v376_v1  ;;  %2064 = vmatmul.mubr.bf16.gmra.mxu1 %v581_v59  ;;  %v552_v5 = vsel %vm456_vm6, %v374_v57, %v504_v63 }
 0x116   :  { %v2009_v4 = vpop.f32.mrf.mxu0 }
 0x117   :  { %vm457_vm8 = vcmp.gt.f32.partialorder %v377_v3, 0.0  ;;  %v505_v7 = vmul.f32 0.2, %v377_v3  ;;  %v398_v8 = vadd.f32 %v2009_v4, %v2475_v21  ;;  %v555_v9 = vsel %vm459_vm7, %v385_v0, %v507_v2 }
 0x118   :  { %v389_v10 = vpop.f32.mrf.mxu0  ;;  %v583_v13 = vpack.c.bf16 %v555_v9, %v554_v6 }
 0x119   :  { %v390_v11 = vadd.f32 %v2475_v21, %v389_v10  ;;  %v553_v12 = vsel %vm457_vm8, %v377_v3, %v505_v7  ;;  %v510_v14 = vmul.f32 0.2, %v398_v8  ;;  %vm462_vm9 = vcmp.gt.f32.partialorder %v398_v8, 0.0 }
 0x11a   :  { %v2010_v15 = vpop.f32.mrf.mxu0  ;;  %v582_v16 = vpack.c.bf16 %v553_v12, %v552_v5 }
 0x11b   :  { %vm460_vm10 = vcmp.gt.f32.partialorder %v390_v11, 0.0  ;;  %v508_v17 = vmul.f32 0.2, %v390_v11  ;;  %v401_v18 = vadd.f32 %v2010_v15, %v2475_v21  ;;  %v558_v25 = vsel %vm462_vm9, %v398_v8, %v510_v14 }
 0x11c   :  { %v392_v19 = vpop.f32.mrf.mxu0  ;;  %2067 = vmatprep.mubr.bf16.mxu1 %v582_v16 }
 0x11d   :  { %vm463_vm11 = vcmp.gt.f32.partialorder %v401_v18, 0.0  ;;  %v511_v20 = vmul.f32 0.2, %v401_v18  ;;  %v393_v22 = vadd.f32 %v2475_v21, %v392_v19  ;;  %2068 = vmatmul.mubr.bf16.gmra.mxu1 %v583_v13  ;;  %v556_v24 = vsel %vm460_vm10, %v390_v11, %v508_v17 }
 0x11e   :  { %v2013_v23 = vpop.f32.mrf.mxu0 }
 0x11f   :  { %vm461_vm12 = vcmp.gt.f32.partialorder %v393_v22, 0.0  ;;  %v509_v27 = vmul.f32 0.2, %v393_v22  ;;  %v414_v28 = vadd.f32 %v2013_v23, %v2475_v21  ;;  %v559_v29 = vsel %vm463_vm11, %v401_v18, %v511_v20 }
 0x120   :  { %v405_v30 = vpop.f32.mrf.mxu0  ;;  %v585_v33 = vpack.c.bf16 %v559_v29, %v558_v25 }
 0x121   :  { %v406_v31 = vadd.f32 %v2475_v21, %v405_v30  ;;  %v557_v32 = vsel %vm461_vm12, %v393_v22, %v509_v27  ;;  %v514_v34 = vmul.f32 0.2, %v414_v28  ;;  %vm466_vm13 = vcmp.gt.f32.partialorder %v414_v28, 0.0 }
 0x122   :  { %v2014_v35 = vpop.f32.mrf.mxu0  ;;  %v584_v36 = vpack.c.bf16 %v557_v32, %v556_v24 }
 0x123   :  { %v512_v37 = vmul.f32 0.2, %v406_v31  ;;  %v417_v38 = vadd.f32 %v2014_v35, %v2475_v21  ;;  %vm464_vm14 = vcmp.gt.f32.partialorder %v406_v31, 0.0  ;;  %v562_v42 = vsel %vm466_vm13, %v414_v28, %v514_v34 }
 0x124   :  { %v408_v39 = vpop.f32.mrf.mxu0  ;;  %2071 = vmatprep.mubr.bf16.mxu1 %v584_v36 }
 0x125   :  { %vm467_vm15 = vcmp.gt.f32.partialorder %v417_v38, 0.0  ;;  %v515_v40 = vmul.f32 0.2, %v417_v38  ;;  %v409_v41 = vadd.f32 %v2475_v21, %v408_v39  ;;  %2072 = vmatmul.mubr.bf16.gmra.mxu1 %v585_v33  ;;  %v560_v44 = vsel %vm464_vm14, %v406_v31, %v512_v37 }
 0x127   :  { %vm465_vm0 = vcmp.gt.f32.partialorder %v409_v41, 0.0  ;;  %v513_v43 = vmul.f32 0.2, %v409_v41  ;;  %v563_v45 = vsel %vm467_vm15, %v417_v38, %v515_v40 }
 0x128   :  { %v587_v47 = vpack.c.bf16 %v563_v45, %v562_v42 }
 0x129   :  { %v561_v46 = vsel %vm465_vm0, %v409_v41, %v513_v43 }
 0x12a   :  { %v586_v48 = vpack.c.bf16 %v561_v46, %v560_v44 }
 0x12c   :  { %2075 = vmatprep.mubr.bf16.mxu1 %v586_v48 }
 0x12d   :  { %2076 = vmatmul.mubr.bf16.gmra.mxu1 %v587_v47 }
 0x195   :  { %v2033_v49 = vpop.f32.mrf.mxu1 }
 0x196   :  { %v702_v52 = vadd.f32 %v2033_v49, %v2531_v50 }
 0x197   :  { %v693_v51 = vpop.f32.mrf.mxu1 }
 0x198   :  { %v694_v21 = vadd.f32 %v2531_v50, %v693_v51  ;;  %v934_v59 = vmul.f32 0.2, %v702_v52  ;;  %vm886_vm3 = vcmp.gt.f32.partialorder %v702_v52, 0.0 }
 0x199   :  { %v2034_v53 = vpop.f32.mrf.mxu1 }
 0x19a   :  { %v705_v54 = vadd.f32 %v2034_v53, %v2531_v50  ;;  %v932_v56 = vmul.f32 0.2, %v694_v21  ;;  %vm884_vm2 = vcmp.gt.f32.partialorder %v694_v21, 0.0  ;;  %v982_v3 = vsel %vm886_vm3, %v702_v52, %v934_v59 }
 0x19b   :  { %v696_v55 = vpop.f32.mrf.mxu1 }
 0x19c   :  { %vm887_vm1 = vcmp.gt.f32.partialorder %v705_v54, 0.0  ;;  %v935_v57 = vmul.f32 0.2, %v705_v54  ;;  %v697_v58 = vadd.f32 %v2531_v50, %v696_v55  ;;  %v980_v0 = vsel %vm884_vm2, %v694_v21, %v932_v56 }
 0x19d   :  { %v2037_v60 = vpop.f32.mrf.mxu1 }
 0x19e   :  { %vm885_vm4 = vcmp.gt.f32.partialorder %v697_v58, 0.0  ;;  %v933_v61 = vmul.f32 0.2, %v697_v58  ;;  %v983_v62 = vsel %vm887_vm1, %v705_v54, %v935_v57  ;;  %v718_v5 = vadd.f32 %v2037_v60, %v2531_v50 }
 0x19f   :  { %v709_v63 = vpop.f32.mrf.mxu1  ;;  %v1029_v7 = vpack.c.bf16 %v983_v62, %v982_v3 }
 0x1a0   :  { %v981_v1 = vsel %vm885_vm4, %v697_v58, %v933_v61  ;;  %v710_v2 = vadd.f32 %v2531_v50, %v709_v63  ;;  %v938_v13 = vmul.f32 0.2, %v718_v5  ;;  %vm890_vm8 = vcmp.gt.f32.partialorder %v718_v5, 0.0 }
 0x1a1   :  { %v1028_v4 = vpack.c.bf16 %v981_v1, %v980_v0  ;;  %v2038_v6 = vpop.f32.mrf.mxu1 }
 0x1a2   :  { %v721_v8 = vadd.f32 %v2038_v6, %v2531_v50  ;;  %v936_v10 = vmul.f32 0.2, %v710_v2  ;;  %vm888_vm7 = vcmp.gt.f32.partialorder %v710_v2, 0.0  ;;  %v986_v22 = vsel %vm890_vm8, %v718_v5, %v938_v13 }
 0x1a3   :  { %v712_v9 = vpop.f32.mrf.mxu1  ;;  %2087 = vmatprep.mubr.msk.bf16.mxu0 %vm1091_vm5, %v1028_v4 }
 0x1a4   :  { %vm891_vm6 = vcmp.gt.f32.partialorder %v721_v8, 0.0  ;;  %v939_v11 = vmul.f32 0.2, %v721_v8  ;;  %v713_v12 = vadd.f32 %v2531_v50, %v712_v9  ;;  %2088 = vmatmul.mubr.msk.bf16.vlgmr.msra.gmra.mxu0 %vm1091_vm5, %v1029_v7  ;;  %v984_v18 = vsel %vm888_vm7, %v710_v2, %v936_v10 }
 0x1a5   :  { %v2041_v14 = vpop.f32.mrf.mxu1 }
 0x1a6   :  { %vm889_vm9 = vcmp.gt.f32.partialorder %v713_v12, 0.0  ;;  %v937_v15 = vmul.f32 0.2, %v713_v12  ;;  %v987_v16 = vsel %vm891_vm6, %v721_v8, %v939_v11  ;;  %v734_v24 = vadd.f32 %v2041_v14, %v2531_v50 }
 0x1a7   :  { %v725_v17 = vpop.f32.mrf.mxu1  ;;  %v1031_v26 = vpack.c.bf16 %v987_v16, %v986_v22 }
 0x1a8   :  { %v985_v19 = vsel %vm889_vm9, %v713_v12, %v937_v15  ;;  %v726_v20 = vadd.f32 %v2531_v50, %v725_v17  ;;  %v942_v32 = vmul.f32 0.2, %v734_v24  ;;  %vm894_vm12 = vcmp.gt.f32.partialorder %v734_v24, 0.0 }
 0x1a9   :  { %v1030_v23 = vpack.c.bf16 %v985_v19, %v984_v18  ;;  %v2042_v25 = vpop.f32.mrf.mxu1 }
 0x1aa   :  { %v737_v27 = vadd.f32 %v2042_v25, %v2531_v50  ;;  %v940_v29 = vmul.f32 0.2, %v726_v20  ;;  %vm892_vm11 = vcmp.gt.f32.partialorder %v726_v20, 0.0  ;;  %v990_v40 = vsel %vm894_vm12, %v734_v24, %v942_v32 }
 0x1ab   :  { %v728_v28 = vpop.f32.mrf.mxu1  ;;  %2091 = vmatprep.mubr.msk.bf16.mxu0 %vm1091_vm5, %v1030_v23 }
 0x1ac   :  { %vm895_vm10 = vcmp.gt.f32.partialorder %v737_v27, 0.0  ;;  %v943_v30 = vmul.f32 0.2, %v737_v27  ;;  %v729_v31 = vadd.f32 %v2531_v50, %v728_v28  ;;  %2092 = vmatmul.mubr.msk.bf16.gmra.mxu0 %vm1091_vm5, %v1031_v26  ;;  %v988_v37 = vsel %vm892_vm11, %v726_v20, %v940_v29 }
 0x1ad   :  { %v2045_v33 = vpop.f32.mrf.mxu1 }
 0x1ae   :  { %vm893_vm13 = vcmp.gt.f32.partialorder %v729_v31, 0.0  ;;  %v941_v34 = vmul.f32 0.2, %v729_v31  ;;  %v991_v35 = vsel %vm895_vm10, %v737_v27, %v943_v30  ;;  %v750_v42 = vadd.f32 %v2045_v33, %v2531_v50 }
 0x1af   :  { %v741_v36 = vpop.f32.mrf.mxu1  ;;  %v1033_v44 = vpack.c.bf16 %v991_v35, %v990_v40 }
 0x1b0   :  { %v989_v38 = vsel %vm893_vm13, %v729_v31, %v941_v34  ;;  %v742_v39 = vadd.f32 %v2531_v50, %v741_v36  ;;  %v946_v51 = vmul.f32 0.2, %v750_v42  ;;  %vm898_vm0 = vcmp.gt.f32.partialorder %v750_v42, 0.0 }
 0x1b1   :  { %v1032_v41 = vpack.c.bf16 %v989_v38, %v988_v37  ;;  %v2046_v43 = vpop.f32.mrf.mxu1 }
 0x1b2   :  { %v753_v45 = vadd.f32 %v2046_v43, %v2531_v50  ;;  %v944_v47 = vmul.f32 0.2, %v742_v39  ;;  %vm896_vm15 = vcmp.gt.f32.partialorder %v742_v39, 0.0  ;;  %v994_v58 = vsel %vm898_vm0, %v750_v42, %v946_v51 }
 0x1b3   :  { %v744_v46 = vpop.f32.mrf.mxu1  ;;  %2095 = vmatprep.mubr.msk.bf16.mxu0 %vm1091_vm5, %v1032_v41 }
 0x1b4   :  { %vm899_vm14 = vcmp.gt.f32.partialorder %v753_v45, 0.0  ;;  %v947_v48 = vmul.f32 0.2, %v753_v45  ;;  %v745_v49 = vadd.f32 %v2531_v50, %v744_v46  ;;  %2096 = vmatmul.mubr.msk.bf16.gmra.mxu0 %vm1091_vm5, %v1033_v44  ;;  %v992_v55 = vsel %vm896_vm15, %v742_v39, %v944_v47 }
 0x1b5   :  { %v2049_v21 = vpop.f32.mrf.mxu1 }
 0x1b6   :  { %vm897_vm1 = vcmp.gt.f32.partialorder %v745_v49, 0.0  ;;  %v945_v52 = vmul.f32 0.2, %v745_v49  ;;  %v995_v53 = vsel %vm899_vm14, %v753_v45, %v947_v48  ;;  %v766_v60 = vadd.f32 %v2049_v21, %v2531_v50 }
 0x1b7   :  { %v757_v54 = vpop.f32.mrf.mxu1  ;;  %v1035_v62 = vpack.c.bf16 %v995_v53, %v994_v58 }
 0x1b8   :  { %v993_v56 = vsel %vm897_vm1, %v745_v49, %v945_v52  ;;  %v758_v57 = vadd.f32 %v2531_v50, %v757_v54  ;;  %v950_v4 = vmul.f32 0.2, %v766_v60  ;;  %vm902_vm4 = vcmp.gt.f32.partialorder %v766_v60, 0.0 }
 0x1b9   :  { %v1034_v59 = vpack.c.bf16 %v993_v56, %v992_v55  ;;  %v2050_v61 = vpop.f32.mrf.mxu1 }
 0x1ba   :  { %v769_v63 = vadd.f32 %v2050_v61, %v2531_v50  ;;  %v948_v1 = vmul.f32 0.2, %v758_v57  ;;  %vm900_vm3 = vcmp.gt.f32.partialorder %v758_v57, 0.0  ;;  %v998_v12 = vsel %vm902_vm4, %v766_v60, %v950_v4 }
 0x1bb   :  { %v760_v0 = vpop.f32.mrf.mxu1  ;;  %2099 = vmatprep.mubr.msk.bf16.mxu0 %vm1091_vm5, %v1034_v59 }
 0x1bc   :  { %vm903_vm2 = vcmp.gt.f32.partialorder %v769_v63, 0.0  ;;  %v951_v2 = vmul.f32 0.2, %v769_v63  ;;  %v761_v3 = vadd.f32 %v2531_v50, %v760_v0  ;;  %2100 = vmatmul.mubr.msk.bf16.gmra.mxu0 %vm1091_vm5, %v1035_v62  ;;  %v996_v9 = vsel %vm900_vm3, %v758_v57, %v948_v1 }
 0x1bd   :  { %v2053_v5 = vpop.f32.mrf.mxu1 }
 0x1be   :  { %vm901_vm6 = vcmp.gt.f32.partialorder %v761_v3, 0.0  ;;  %v949_v6 = vmul.f32 0.2, %v761_v3  ;;  %v999_v7 = vsel %vm903_vm2, %v769_v63, %v951_v2  ;;  %v782_v14 = vadd.f32 %v2053_v5, %v2531_v50 }
 0x1bf   :  { %v773_v8 = vpop.f32.mrf.mxu1  ;;  %v1037_v16 = vpack.c.bf16 %v999_v7, %v998_v12 }
 0x1c0   :  { %v997_v10 = vsel %vm901_vm6, %v761_v3, %v949_v6  ;;  %v774_v11 = vadd.f32 %v2531_v50, %v773_v8  ;;  %v954_v23 = vmul.f32 0.2, %v782_v14  ;;  %vm906_vm9 = vcmp.gt.f32.partialorder %v782_v14, 0.0 }
 0x1c1   :  { %v1036_v13 = vpack.c.bf16 %v997_v10, %v996_v9  ;;  %v2054_v15 = vpop.f32.mrf.mxu1 }
 0x1c2   :  { %v785_v17 = vadd.f32 %v2054_v15, %v2531_v50  ;;  %v952_v19 = vmul.f32 0.2, %v774_v11  ;;  %vm904_vm8 = vcmp.gt.f32.partialorder %v774_v11, 0.0  ;;  %v1002_v31 = vsel %vm906_vm9, %v782_v14, %v954_v23 }
 0x1c3   :  { %v776_v18 = vpop.f32.mrf.mxu1  ;;  %2103 = vmatprep.mubr.msk.bf16.mxu0 %vm1091_vm5, %v1036_v13 }
 0x1c4   :  { %vm907_vm7 = vcmp.gt.f32.partialorder %v785_v17, 0.0  ;;  %v955_v20 = vmul.f32 0.2, %v785_v17  ;;  %v777_v22 = vadd.f32 %v2531_v50, %v776_v18  ;;  %2104 = vmatmul.mubr.msk.bf16.gmra.mxu0 %vm1091_vm5, %v1037_v16  ;;  %v1000_v28 = vsel %vm904_vm8, %v774_v11, %v952_v19 }
 0x1c5   :  { %v2057_v24 = vpop.f32.mrf.mxu1 }
 0x1c6   :  { %vm905_vm10 = vcmp.gt.f32.partialorder %v777_v22, 0.0  ;;  %v953_v25 = vmul.f32 0.2, %v777_v22  ;;  %v1003_v26 = vsel %vm907_vm7, %v785_v17, %v955_v20  ;;  %v798_v33 = vadd.f32 %v2057_v24, %v2531_v50 }
 0x1c7   :  { %v789_v27 = vpop.f32.mrf.mxu1  ;;  %v1039_v35 = vpack.c.bf16 %v1003_v26, %v1002_v31 }
 0x1c8   :  { %v1001_v29 = vsel %vm905_vm10, %v777_v22, %v953_v25  ;;  %v790_v30 = vadd.f32 %v2531_v50, %v789_v27  ;;  %v958_v41 = vmul.f32 0.2, %v798_v33  ;;  %vm910_vm13 = vcmp.gt.f32.partialorder %v798_v33, 0.0 }
 0x1c9   :  { %v1038_v32 = vpack.c.bf16 %v1001_v29, %v1000_v28  ;;  %v2058_v34 = vpop.f32.mrf.mxu1 }
 0x1ca   :  { %v801_v36 = vadd.f32 %v2058_v34, %v2531_v50  ;;  %v956_v38 = vmul.f32 0.2, %v790_v30  ;;  %vm908_vm12 = vcmp.gt.f32.partialorder %v790_v30, 0.0  ;;  %v1006_v51 = vsel %vm910_vm13, %v798_v33, %v958_v41 }
 0x1cb   :  { %v792_v37 = vpop.f32.mrf.mxu1  ;;  %2107 = vmatprep.mubr.msk.bf16.mxu0 %vm1091_vm5, %v1038_v32 }
 0x1cc   :  { %vm911_vm11 = vcmp.gt.f32.partialorder %v801_v36, 0.0  ;;  %v959_v39 = vmul.f32 0.2, %v801_v36  ;;  %v793_v40 = vadd.f32 %v2531_v50, %v792_v37  ;;  %2108 = vmatmul.mubr.msk.bf16.gmra.mxu0 %vm1091_vm5, %v1039_v35  ;;  %v1004_v47 = vsel %vm908_vm12, %v790_v30, %v956_v38 }
 0x1cd   :  { %v2061_v42 = vpop.f32.mrf.mxu1 }
 0x1ce   :  { %vm909_vm14 = vcmp.gt.f32.partialorder %v793_v40, 0.0  ;;  %v957_v43 = vmul.f32 0.2, %v793_v40  ;;  %v1007_v44 = vsel %vm911_vm11, %v801_v36, %v959_v39  ;;  %v814_v45 = vadd.f32 %v2061_v42, %v2531_v50 }
 0x1cf   :  { %v805_v46 = vpop.f32.mrf.mxu1  ;;  %v1041_v53 = vpack.c.bf16 %v1007_v44, %v1006_v51 }
 0x1d0   :  { %v1005_v48 = vsel %vm909_vm14, %v793_v40, %v957_v43  ;;  %v806_v49 = vadd.f32 %v2531_v50, %v805_v46  ;;  %v962_v55 = vmul.f32 0.2, %v814_v45  ;;  %vm914_vm0 = vcmp.gt.f32.partialorder %v814_v45, 0.0 }
 0x1d1   :  { %v1040_v21 = vpack.c.bf16 %v1005_v48, %v1004_v47  ;;  %v2062_v52 = vpop.f32.mrf.mxu1 }
 0x1d2   :  { %v817_v54 = vadd.f32 %v2062_v52, %v2531_v50  ;;  %v960_v57 = vmul.f32 0.2, %v806_v49  ;;  %vm912_vm1 = vcmp.gt.f32.partialorder %v806_v49, 0.0  ;;  %v1010_v1 = vsel %vm914_vm0, %v814_v45, %v962_v55 }
 0x1d3   :  { %v808_v56 = vpop.f32.mrf.mxu1  ;;  %2111 = vmatprep.mubr.msk.bf16.mxu0 %vm1091_vm5, %v1040_v21 }
 0x1d4   :  { %vm915_vm15 = vcmp.gt.f32.partialorder %v817_v54, 0.0  ;;  %v963_v58 = vmul.f32 0.2, %v817_v54  ;;  %v809_v59 = vadd.f32 %v2531_v50, %v808_v56  ;;  %2112 = vmatmul.mubr.msk.bf16.gmra.mxu0 %vm1091_vm5, %v1041_v53  ;;  %v1008_v2 = vsel %vm912_vm1, %v806_v49, %v960_v57 }
 0x1d5   :  { %v2065_v60 = vpop.f32.mrf.mxu1 }
 0x1d6   :  { %v1011_v61 = vsel %vm915_vm15, %v817_v54, %v963_v58  ;;  %vm913_vm2 = vcmp.gt.f32.partialorder %v809_v59, 0.0  ;;  %v961_v62 = vmul.f32 0.2, %v809_v59  ;;  %v830_v63 = vadd.f32 %v2065_v60, %v2531_v50 }
 0x1d7   :  { %v821_v0 = vpop.f32.mrf.mxu1  ;;  %v1043_v5 = vpack.c.bf16 %v1011_v61, %v1010_v1 }
 0x1d8   :  { %v1009_v3 = vsel %vm913_vm2, %v809_v59, %v961_v62  ;;  %v822_v4 = vadd.f32 %v2531_v50, %v821_v0  ;;  %v966_v7 = vmul.f32 0.2, %v830_v63  ;;  %vm918_vm3 = vcmp.gt.f32.partialorder %v830_v63, 0.0 }
 0x1d9   :  { %v1042_v6 = vpack.c.bf16 %v1009_v3, %v1008_v2  ;;  %v2066_v8 = vpop.f32.mrf.mxu1 }
 0x1da   :  { %vm916_vm4 = vcmp.gt.f32.partialorder %v822_v4, 0.0  ;;  %v964_v9 = vmul.f32 0.2, %v822_v4  ;;  %v833_v10 = vadd.f32 %v2066_v8, %v2531_v50  ;;  %v1014_v14 = vsel %vm918_vm3, %v830_v63, %v966_v7 }
 0x1db   :  { %2115 = vmatprep.mubr.msk.bf16.mxu0 %vm1091_vm5, %v1042_v6  ;;  %v824_v11 = vpop.f32.mrf.mxu1 }
 0x1dc   :  { %2116 = vmatmul.mubr.msk.bf16.gmra.mxu0 %vm1091_vm5, %v1043_v5  ;;  %vm919_vm6 = vcmp.gt.f32.partialorder %v833_v10, 0.0  ;;  %v967_v12 = vmul.f32 0.2, %v833_v10  ;;  %v825_v13 = vadd.f32 %v2531_v50, %v824_v11  ;;  %v1012_v15 = vsel %vm916_vm4, %v822_v4, %v964_v9 }
 0x1dd   :  { %v2069_v16 = vpop.f32.mrf.mxu1  ;;  %vm1558_vm4 = vcmask 261120  }
 0x1de   :  { %v1015_v17 = vsel %vm919_vm6, %v833_v10, %v967_v12  ;;  %vm917_vm7 = vcmp.gt.f32.partialorder %v825_v13, 0.0  ;;  %v965_v18 = vmul.f32 0.2, %v825_v13  ;;  %v846_v19 = vadd.f32 %v2069_v16, %v2531_v50  ;;  %v2608_v12 = vld [vmem:[%s2834_s7] sm:$0xf] }
 0x1df   :  { %v837_v20 = vpop.f32.mrf.mxu1  ;;  %v1045_v22 = vpack.c.bf16 %v1015_v17, %v1014_v14  ;;  %1954 = vmatprep.mubr.msk.bf16.mxu1 %vm1558_vm4, %v2608_v12 }
 0x1e0   :  { %v1013_v23 = vsel %vm917_vm7, %v825_v13, %v965_v18  ;;  %v838_v24 = vadd.f32 %v2531_v50, %v837_v20  ;;  %v970_v26 = vmul.f32 0.2, %v846_v19  ;;  %vm922_vm8 = vcmp.gt.f32.partialorder %v846_v19, 0.0 }
 0x1e1   :  { %v1044_v25 = vpack.c.bf16 %v1013_v23, %v1012_v15  ;;  %v2070_v27 = vpop.f32.mrf.mxu1 }
 0x1e2   :  { %vm920_vm9 = vcmp.gt.f32.partialorder %v838_v24, 0.0  ;;  %v968_v28 = vmul.f32 0.2, %v838_v24  ;;  %v849_v29 = vadd.f32 %v2070_v27, %v2531_v50  ;;  %v1018_v33 = vsel %vm922_vm8, %v846_v19, %v970_v26 }
 0x1e3   :  { %v840_v30 = vpop.f32.mrf.mxu1  ;;  %2119 = vmatprep.mubr.msk.bf16.mxu0 %vm1091_vm5, %v1044_v25 }
 0x1e4   :  { %vm923_vm10 = vcmp.gt.f32.partialorder %v849_v29, 0.0  ;;  %v971_v31 = vmul.f32 0.2, %v849_v29  ;;  %v841_v32 = vadd.f32 %v2531_v50, %v840_v30  ;;  %2120 = vmatmul.mubr.msk.bf16.gmra.mxu0 %vm1091_vm5, %v1045_v22  ;;  %v1016_v34 = vsel %vm920_vm9, %v838_v24, %v968_v28 }
 0x1e5   :  { %v2073_v35 = vpop.f32.mrf.mxu1 }
 0x1e6   :  { %v1019_v36 = vsel %vm923_vm10, %v849_v29, %v971_v31  ;;  %vm921_vm11 = vcmp.gt.f32.partialorder %v841_v32, 0.0  ;;  %v969_v37 = vmul.f32 0.2, %v841_v32  ;;  %v862_v38 = vadd.f32 %v2073_v35, %v2531_v50 }
 0x1e7   :  { %v853_v39 = vpop.f32.mrf.mxu1  ;;  %v1047_v40 = vpack.c.bf16 %v1019_v36, %v1018_v33 }
 0x1e8   :  { %v1017_v41 = vsel %vm921_vm11, %v841_v32, %v969_v37  ;;  %v854_v42 = vadd.f32 %v2531_v50, %v853_v39  ;;  %v974_v44 = vmul.f32 0.2, %v862_v38  ;;  %vm926_vm12 = vcmp.gt.f32.partialorder %v862_v38, 0.0 }
 0x1e9   :  { %v1046_v43 = vpack.c.bf16 %v1017_v41, %v1016_v34  ;;  %v2074_v45 = vpop.f32.mrf.mxu1 }
 0x1ea   :  { %vm924_vm13 = vcmp.gt.f32.partialorder %v854_v42, 0.0  ;;  %v972_v46 = vmul.f32 0.2, %v854_v42  ;;  %v865_v47 = vadd.f32 %v2074_v45, %v2531_v50  ;;  %v1022_v21 = vsel %vm926_vm12, %v862_v38, %v974_v44 }
 0x1eb   :  { %v856_v48 = vpop.f32.mrf.mxu1  ;;  %2123 = vmatprep.mubr.msk.bf16.mxu0 %vm1091_vm5, %v1046_v43 }
 0x1ec   :  { %vm927_vm14 = vcmp.gt.f32.partialorder %v865_v47, 0.0  ;;  %v975_v49 = vmul.f32 0.2, %v865_v47  ;;  %v857_v51 = vadd.f32 %v2531_v50, %v856_v48  ;;  %2124 = vmatmul.mubr.msk.bf16.gmra.mxu0 %vm1091_vm5, %v1047_v40  ;;  %v1020_v52 = vsel %vm924_vm13, %v854_v42, %v972_v46 }
 0x1ed   :  { %v2077_v53 = vpop.f32.mrf.mxu1 }
 0x1ee   :  { %v1023_v54 = vsel %vm927_vm14, %v865_v47, %v975_v49  ;;  %vm925_vm15 = vcmp.gt.f32.partialorder %v857_v51, 0.0  ;;  %v973_v55 = vmul.f32 0.2, %v857_v51  ;;  %v878_v56 = vadd.f32 %v2077_v53, %v2531_v50 }
 0x1ef   :  { %v869_v57 = vpop.f32.mrf.mxu1  ;;  %v1049_v58 = vpack.c.bf16 %v1023_v54, %v1022_v21 }
 0x1f0   :  { %v1021_v59 = vsel %vm925_vm15, %v857_v51, %v973_v55  ;;  %v870_v60 = vadd.f32 %v2531_v50, %v869_v57  ;;  %v978_v62 = vmul.f32 0.2, %v878_v56  ;;  %vm930_vm0 = vcmp.gt.f32.partialorder %v878_v56, 0.0 }
 0x1f1   :  { %v1048_v61 = vpack.c.bf16 %v1021_v59, %v1020_v52  ;;  %v2078_v63 = vpop.f32.mrf.mxu1 }
 0x1f2   :  { %v976_v0 = vmul.f32 0.2, %v870_v60  ;;  %v881_v1 = vadd.f32 %v2078_v63, %v2531_v50  ;;  %vm928_vm1 = vcmp.gt.f32.partialorder %v870_v60, 0.0  ;;  %v1026_v5 = vsel %vm930_vm0, %v878_v56, %v978_v62 }
 0x1f3   :  { %v872_v2 = vpop.f32.mrf.mxu1  ;;  %2127 = vmatprep.mubr.msk.bf16.mxu0 %vm1091_vm5, %v1048_v61 }
 0x1f4   :  { %vm931_vm2 = vcmp.gt.f32.partialorder %v881_v1, 0.0  ;;  %v979_v3 = vmul.f32 0.2, %v881_v1  ;;  %v873_v4 = vadd.f32 %v2531_v50, %v872_v2  ;;  %2128 = vmatmul.mubr.msk.bf16.gmra.mxu0 %vm1091_vm5, %v1049_v58  ;;  %v1024_v6 = vsel %vm928_vm1, %v870_v60, %v976_v0  ;;  %v2613_v50 = vld [vmem:[%s2833_s6] ss:$0 sm:$0xff] }
 0x1f6   :  { %v1027_v7 = vsel %vm931_vm2, %v881_v1, %v979_v3  ;;  %vm929_vm3 = vcmp.gt.f32.partialorder %v873_v4, 0.0  ;;  %v977_v8 = vmul.f32 0.2, %v873_v4 }
 0x1f7   :  { %v1051_v9 = vpack.c.bf16 %v1027_v7, %v1026_v5 }
 0x1f8   :  { %v1025_v10 = vsel %vm929_vm3, %v873_v4, %v977_v8 }
 0x1f9   :  { %v1050_v11 = vpack.c.bf16 %v1025_v10, %v1024_v6 }
 0x1fb   :  { %2131 = vmatprep.mubr.msk.bf16.mxu0 %vm1091_vm5, %v1050_v11 }
 0x1fc   :  { %2132 = vmatmul.mubr.msk.bf16.gmra.mxu0 %vm1091_vm5, %v1051_v9 }
 0x264   :  { %v2089_v13 = vpop.f32.mrf.mxu0 }
 0x265   :  { %v1207_v14 = vadd.f32 %v2089_v13, %v2613_v50 }
 0x266   :  { %v1198_v15 = vpop.f32.mrf.mxu0 }
 0x267   :  { %v1199_v16 = vadd.f32 %v2613_v50, %v1198_v15  ;;  %v1439_v17 = vmul.f32 0.2, %v1207_v14  ;;  %vm1391_vm5 = vcmp.gt.f32.partialorder %v1207_v14, 0.0 }
 0x268   :  { %v2090_v18 = vpop.f32.mrf.mxu0 }
 0x269   :  { %v1210_v19 = vadd.f32 %v2090_v18, %v2613_v50  ;;  %v1437_v22 = vmul.f32 0.2, %v1199_v16  ;;  %v2621_v25 = vsel %vm1391_vm5, %v1207_v14, %v1439_v17  ;;  %vm1389_vm7 = vcmp.gt.f32.partialorder %v1199_v16, 0.0 }
 0x26a   :  { %v1201_v20 = vpop.f32.mrf.mxu0 }
 0x26b   :  { %vm1392_vm6 = vcmp.gt.f32.partialorder %v1210_v19, 0.0  ;;  %v1440_v23 = vmul.f32 0.2, %v1210_v19  ;;  %v1202_v24 = vadd.f32 %v2613_v50, %v1201_v20  ;;  %v2628_v32 = vsel %vm1389_vm7, %v1199_v16, %v1437_v22 }
 0x26c   :  { %v2093_v26 = vpop.f32.mrf.mxu0 }
 0x26d   :  { %v2623_v27 = vsel %vm1392_vm6, %v1210_v19, %v1440_v23  ;;  %vm1390_vm8 = vcmp.gt.f32.partialorder %v1202_v24, 0.0  ;;  %v1438_v28 = vmul.f32 0.2, %v1202_v24  ;;  %v1223_v29 = vadd.f32 %v2093_v26, %v2613_v50 }
 0x26e   :  { %v1214_v30 = vpop.f32.mrf.mxu0  ;;  %v1535_v31 = vpack.c.bf16 %v2623_v27, %v2621_v25 }
 0x26f   :  { %v2630_v33 = vsel %vm1390_vm8, %v1202_v24, %v1438_v28  ;;  %v1215_v34 = vadd.f32 %v2613_v50, %v1214_v30  ;;  %v1443_v37 = vmul.f32 0.2, %v1223_v29  ;;  %vm1395_vm9 = vcmp.gt.f32.partialorder %v1223_v29, 0.0 }
 0x270   :  { %v2094_v35 = vpop.f32.mrf.mxu0  ;;  %v1534_v36 = vpack.c.bf16 %v2630_v33, %v2628_v32 }
 0x271   :  { %v1226_v38 = vadd.f32 %v2094_v35, %v2613_v50  ;;  %v1441_v40 = vmul.f32 0.2, %v1215_v34  ;;  %vm1393_vm11 = vcmp.gt.f32.partialorder %v1215_v34, 0.0  ;;  %v2637_v44 = vsel %vm1395_vm9, %v1223_v29, %v1443_v37 }
 0x272   :  { %v1217_v39 = vpop.f32.mrf.mxu0  ;;  %v1563_v25 = vsel %vm1558_vm4, %v1534_v36, 0 }
 0x273   :  { %vm1396_vm10 = vcmp.gt.f32.partialorder %v1226_v38, 0.0  ;;  %v1444_v41 = vmul.f32 0.2, %v1226_v38  ;;  %v1218_v42 = vadd.f32 %v2613_v50, %v1217_v39  ;;  %v2645_v49 = vsel %vm1393_vm11, %v1215_v34, %v1441_v40 }
 0x274   :  { %v2097_v43 = vpop.f32.mrf.mxu0 }
 0x275   :  { %v2639_v45 = vsel %vm1396_vm10, %v1226_v38, %v1444_v41  ;;  %vm1394_vm12 = vcmp.gt.f32.partialorder %v1218_v42, 0.0  ;;  %v1442_v46 = vmul.f32 0.2, %v1218_v42  ;;  %v2688_v40 = vadd.f32 %v2097_v43, %v2613_v50 }
 0x276   :  { %v2641_v47 = vpop.f32.mrf.mxu0  ;;  %v1537_v48 = vpack.c.bf16 %v2639_v45, %v2637_v44  ;;  %v1566_v45 = vsel %vm1558_vm4, %v1535_v31, 0 }
 0x277   :  { %v2647_v51 = vsel %vm1394_vm12, %v1218_v42, %v1442_v46 }
 0x278   :  { %v2098_v21 = vpop.f32.mrf.mxu0  ;;  %v1536_v52 = vpack.c.bf16 %v2647_v51, %v2645_v49 }
 0x279   :  { %v2692_v46 = vadd.f32 %v2098_v21, %v2613_v50 }
 0x27a   :  { %v2651_v53 = vpop.f32.mrf.mxu0 }
 0x27c   :  { %v2101_v54 = vpop.f32.mrf.mxu0 }
 0x27d   :  { %v1255_v22 = vadd.f32 %v2101_v54, %v2613_v50 }
 0x27e   :  { %v1246_v55 = vpop.f32.mrf.mxu0 }
 0x27f   :  { %v1451_v29 = vmul.f32 0.2, %v1255_v22  ;;  %v1247_v30 = vadd.f32 %v2613_v50, %v1246_v55  ;;  %vm1403_vm2 = vcmp.gt.f32.partialorder %v1255_v22, 0.0 }
 0x280   :  { %v2102_v56 = vpop.f32.mrf.mxu0 }
 0x281   :  { %v1258_v20 = vadd.f32 %v2102_v56, %v2613_v50  ;;  %v1499_v54 = vsel %vm1403_vm2, %v1255_v22, %v1451_v29  ;;  %vm1401_vm5 = vcmp.gt.f32.partialorder %v1247_v30, 0.0 }
 0x282   :  { %v1249_v57 = vpop.f32.mrf.mxu0 }
 0x283   :  { %v1452_v26 = vmul.f32 0.2, %v1258_v20  ;;  %vm1404_vm1 = vcmp.gt.f32.partialorder %v1258_v20, 0.0  ;;  %v1250_v34 = vadd.f32 %v2613_v50, %v1249_v57 }
 0x284   :  { %v2105_v58 = vpop.f32.mrf.mxu0 }
 0x285   :  { %v1271_v59 = vadd.f32 %v2105_v58, %v2613_v50  ;;  %v1500_v41 = vsel %vm1404_vm1, %v1258_v20, %v1452_v26  ;;  %v1450_v55 = vmul.f32 0.2, %v1250_v34  ;;  %vm1402_vm9 = vcmp.gt.f32.partialorder %v1250_v34, 0.0 }
 0x286   :  { %v1262_v60 = vpop.f32.mrf.mxu0  ;;  %vm1399_vm1 = vcmp.gt.f32.partialorder %v2688_v40, 0.0 }
 0x287   :  { %v1263_v61 = vadd.f32 %v2613_v50, %v1262_v60  ;;  %v1455_v63 = vmul.f32 0.2, %v1271_v59  ;;  %vm1407_vm13 = vcmp.gt.f32.partialorder %v1271_v59, 0.0 }
 0x288   :  { %v2106_v62 = vpop.f32.mrf.mxu0 }
 0x289   :  { %v1274_v0 = vadd.f32 %v2106_v62, %v2613_v50  ;;  %v1453_v2 = vmul.f32 0.2, %v1263_v61  ;;  %vm1405_vm15 = vcmp.gt.f32.partialorder %v1263_v61, 0.0  ;;  %v2659_v6 = vsel %vm1407_vm13, %v1271_v59, %v1455_v63 }
 0x28a   :  { %v1265_v1 = vpop.f32.mrf.mxu0 }
 0x28b   :  { %vm1408_vm14 = vcmp.gt.f32.partialorder %v1274_v0, 0.0  ;;  %v1456_v3 = vmul.f32 0.2, %v1274_v0  ;;  %v1266_v4 = vadd.f32 %v2613_v50, %v1265_v1  ;;  %v2667_v11 = vsel %vm1405_vm15, %v1263_v61, %v1453_v2 }
 0x28c   :  { %v2657_v5 = vpop.f32.mrf.mxu0  ;;  %v1541_v61 = vpack.c.bf16 %v1500_v41, %v1499_v54  ;;  %v1449_v1 = vmul.f32 0.2, %v1247_v30 }
 0x28d   :  { %v2661_v7 = vsel %vm1408_vm14, %v1274_v0, %v1456_v3  ;;  %vm1406_vm0 = vcmp.gt.f32.partialorder %v1266_v4, 0.0  ;;  %v1454_v8 = vmul.f32 0.2, %v1266_v4 }
 0x28e   :  { %v1543_v9 = vpack.c.bf16 %v2661_v7, %v2659_v6  ;;  %v2665_v10 = vpop.f32.mrf.mxu0 }
 0x28f   :  { %v2669_v13 = vsel %vm1406_vm0, %v1266_v4, %v1454_v8  ;;  %vm1400_vm0 = vcmp.gt.f32.partialorder %v2692_v46, 0.0 }
 0x290   :  { %v1542_v14 = vpack.c.bf16 %v2669_v13, %v2667_v11  ;;  %v2673_v15 = vpop.f32.mrf.mxu0  ;;  %v2214_v11 = vmov 0.0  }
 0x292   :  { %v2675_v16 = vpop.f32.mrf.mxu0 }
 0x294   :  { %v2113_v17 = vpop.f32.mrf.mxu0 }
 0x295   :  { %v1303_v2 = vadd.f32 %v2113_v17, %v2613_v50 }
 0x296   :  { %v2677_v18 = vpop.f32.mrf.mxu0 }
 0x297   :  { %v1463_v41 = vmul.f32 0.2, %v1303_v2  ;;  %vm1415_vm14 = vcmp.gt.f32.partialorder %v1303_v2, 0.0 }
 0x298   :  { %v2114_v19 = vpop.f32.mrf.mxu0 }
 0x299   :  { %v1306_v60 = vadd.f32 %v2114_v19, %v2613_v50 }
 0x29a   :  { %v2681_v23 = vpop.f32.mrf.mxu0 }
 0x29b   :  { %vm1416_vm11 = vcmp.gt.f32.partialorder %v1306_v60, 0.0 }
 0x29c   :  { %v2117_v24 = vpop.f32.mrf.mxu0 }
 0x29d   :  { %v1319_v28 = vadd.f32 %v2117_v24, %v2613_v50  ;;  %v1464_v24 = vmul.f32 0.2, %v1306_v60 }
 0x29e   :  { %v1310_v35 = vpop.f32.mrf.mxu0 }
 0x29f   :  { %v1311_v37 = vadd.f32 %v2613_v50, %v1310_v35  ;;  %v1467_v38 = vmul.f32 0.2, %v1319_v28  ;;  %vm1419_vm3 = vcmp.gt.f32.partialorder %v1319_v28, 0.0  ;;  %v1498_v35 = vsel %vm1402_vm9, %v1250_v34, %v1450_v55 }
 0x2a0   :  { %v2118_v39 = vpop.f32.mrf.mxu0  ;;  %v1512_v55 = vsel %vm1416_vm11, %v1306_v60, %v1464_v24  ;;  %v1295_v60 = vadd.f32 %v2613_v50, %v2677_v18 }
 0x2a1   :  { %v1322_v42 = vadd.f32 %v2118_v39, %v2613_v50  ;;  %v1465_v57 = vmul.f32 0.2, %v1311_v37  ;;  %v1515_v43 = vsel %vm1419_vm3, %v1319_v28, %v1467_v38  ;;  %vm1417_vm7 = vcmp.gt.f32.partialorder %v1311_v37, 0.0 }
 0x2a2   :  { %v1313_v56 = vpop.f32.mrf.mxu0  ;;  %v1584_v28 = vsel %vm1558_vm4, %v1541_v61, 0  ;;  %v1497_v39 = vsel %vm1401_vm5, %v1247_v30, %v1449_v1  ;;  %vm1413_vm3 = vcmp.gt.f32.partialorder %v1295_v60, 0.0 }
 0x2a3   :  { %vm1420_vm6 = vcmp.gt.f32.partialorder %v1322_v42, 0.0  ;;  %v1468_v58 = vmul.f32 0.2, %v1322_v42  ;;  %v1314_v59 = vadd.f32 %v2613_v50, %v1313_v56  ;;  %v1513_v8 = vsel %vm1417_vm7, %v1311_v37, %v1465_v57 }
 0x2a4   :  { %v2121_v62 = vpop.f32.mrf.mxu0  ;;  %v1448_v37 = vmul.f32 0.2, %v2692_v46  ;;  %v1298_v57 = vadd.f32 %v2613_v50, %v2681_v23 }
 0x2a5   :  { %v1516_v63 = vsel %vm1420_vm6, %v1322_v42, %v1468_v58  ;;  %vm1418_vm8 = vcmp.gt.f32.partialorder %v1314_v59, 0.0  ;;  %v1466_v0 = vmul.f32 0.2, %v1314_v59  ;;  %v1335_v21 = vadd.f32 %v2121_v62, %v2613_v50 }
 0x2a6   :  { %v1549_v3 = vpack.c.bf16 %v1516_v63, %v1515_v43  ;;  %v1326_v4 = vpop.f32.mrf.mxu0  ;;  %v1540_v58 = vpack.c.bf16 %v1498_v35, %v1497_v39  ;;  %v1447_v62 = vmul.f32 0.2, %v2688_v40  ;;  %v1511_v63 = vsel %vm1415_vm14, %v1303_v2, %v1463_v41 }
 0x2a7   :  { %v1514_v20 = vsel %vm1418_vm8, %v1314_v59, %v1466_v0  ;;  %v1471_v22 = vmul.f32 0.2, %v1335_v21  ;;  %v1327_v19 = vadd.f32 %v2613_v50, %v1326_v4  ;;  %vm1423_vm10 = vcmp.gt.f32.partialorder %v1335_v21, 0.0 }
 0x2a8   :  { %v1548_v26 = vpack.c.bf16 %v1514_v20, %v1513_v8  ;;  %2155 = vmatprep.subr.msk.bf16.mxu1 %vm1558_vm4, %v1549_v3  ;;  %v2122_v29 = vpop.f32.mrf.mxu0  ;;  %v1547_v23 = vpack.c.bf16 %v1512_v55, %v1511_v63  ;;  %v1496_v4 = vsel %vm1400_vm0, %v2692_v46, %v1448_v37  ;;  %v1234_v2 = vadd.f32 %v2613_v50, %v2651_v53 }
 0x2a9   :  { %1939 = vmatpush3.bf16.xpose.msra.mxu1 %v1584_v28  ;;  %v1469_v38 = vmul.f32 0.2, %v1327_v19  ;;  %v1338_v17 = vadd.f32 %v2122_v29, %v2613_v50  ;;  %vm1421_vm12 = vcmp.gt.f32.partialorder %v1327_v19, 0.0  ;;  %v2705_v54 = vsel %vm1423_vm10, %v1335_v21, %v1471_v22 }
 0x2aa   :  { %2156 = vmatprep.subr.msk.bf16.mxu1 %vm1558_vm4, %v1548_v26  ;;  %v1329_v42 = vpop.f32.mrf.mxu0  ;;  %v1581_v21 = vsel %vm1558_vm4, %v1540_v58, 0  ;;  %v1462_v8 = vmul.f32 0.2, %v1298_v57  ;;  %vm1414_vm2 = vcmp.gt.f32.partialorder %v1298_v57, 0.0  ;;  %v1495_v18 = vsel %vm1399_vm1, %v2688_v40, %v1447_v62 }
 0x2ab   :  { %vm1424_vm13 = vcmp.gt.f32.partialorder %v1338_v17, 0.0  ;;  %v1472_v56 = vmul.f32 0.2, %v1338_v17  ;;  %v1330_v34 = vadd.f32 %v2613_v50, %v1329_v42  ;;  %v2710_v59 = vsel %vm1421_vm12, %v1327_v19, %v1469_v38 }
 0x2ac   :  { %v2724_v1 = vpop.f32.mrf.mxu0  ;;  %v1231_v20 = vadd.f32 %v2613_v50, %v2641_v47  ;;  %v1461_v22 = vmul.f32 0.2, %v1295_v60  ;;  %v1539_v19 = vpack.c.bf16 %v1496_v4, %v1495_v18  ;;  %v1446_v26 = vmul.f32 0.2, %v1234_v2 }
 0x2ad   :  { %v2712_v30 = vsel %vm1424_vm13, %v1338_v17, %v1472_v56  ;;  %vm1422_vm15 = vcmp.gt.f32.partialorder %v1330_v34, 0.0  ;;  %v1470_v43 = vmul.f32 0.2, %v1330_v34  ;;  %v1290_v46 = vadd.f32 %v2673_v15, %v2613_v50 }
 0x2ae   :  { %v1551_v61 = vpack.c.bf16 %v2712_v30, %v2705_v54  ;;  %v2735_v24 = vpop.f32.mrf.mxu0  ;;  %v1510_v53 = vsel %vm1414_vm2, %v1298_v57, %v1462_v8  ;;  %vm1398_vm5 = vcmp.gt.f32.partialorder %v1234_v2, 0.0  ;;  %v1445_v28 = vmul.f32 0.2, %v1231_v20 }
 0x2af   :  { %v2720_v0 = vsel %vm1422_vm15, %v1330_v34, %v1470_v43  ;;  %v1287_v29 = vadd.f32 %v2657_v5, %v2613_v50  ;;  %v1509_v35 = vsel %vm1413_vm3, %v1295_v60, %v1461_v22  ;;  %vm1397_vm6 = vcmp.gt.f32.partialorder %v1231_v20, 0.0 }
 0x2b0   :  { %v1550_v3 = vpack.c.bf16 %v2720_v0, %v2710_v59  ;;  %v1546_v40 = vpack.c.bf16 %v1510_v53, %v1509_v35  ;;  %v1578_v47 = vsel %vm1558_vm4, %v1539_v19, 0  ;;  %v2742_v38 = vpop.f32.mrf.mxu0  ;;  %v1494_v17 = vsel %vm1398_vm5, %v1234_v2, %v1446_v26 }
 0x2b1   :  { %1941 = vmatpush3.bf16.xpose.msra.mxu1 %v1581_v21  ;;  %v1460_v37 = vmul.f32 0.2, %v1290_v46  ;;  %vm1412_vm7 = vcmp.gt.f32.partialorder %v1290_v46, 0.0  ;;  %v1493_v15 = vsel %vm1397_vm6, %v1231_v20, %v1445_v28  ;;  %v1459_v39 = vmul.f32 0.2, %v1287_v29 }
 0x2b2   :  { %2157 = vmatprep.subr.msk.bf16.mxu1 %vm1558_vm4, %v1547_v23  ;;  %vm1411_vm8 = vcmp.gt.f32.partialorder %v1287_v29, 0.0  ;;  %v1538_v41 = vpack.c.bf16 %v1494_v17, %v1493_v15  ;;  %v2745_v42 = vpop.f32.mrf.mxu0  ;;  %v1282_v56 = vadd.f32 %v2613_v50, %v2675_v16  ;;  %v1279_v55 = vadd.f32 %v2613_v50, %v2665_v10 }
 0x2b3   :  { %v1508_v5 = vsel %vm1412_vm7, %v1290_v46, %v1460_v37  ;;  %v1507_v34 = vsel %vm1411_vm8, %v1287_v29, %v1459_v39  ;;  %v1572_v10 = vsel %vm1558_vm4, %v1537_v48, 0  ;;  %v1569_v8 = vsel %vm1558_vm4, %v1536_v52, 0 }
 0x2b4   :  { %v1545_v57 = vpack.c.bf16 %v1508_v5, %v1507_v34  ;;  %v1575_v58 = vsel %vm1558_vm4, %v1538_v41, 0  ;;  %v2129_v43 = vpop.f32.mrf.mxu0  ;;  %v1458_v62 = vmul.f32 0.2, %v1282_v56  ;;  %vm1410_vm9 = vcmp.gt.f32.partialorder %v1282_v56, 0.0 }
 0x2b5   :  { %v1457_v63 = vmul.f32 0.2, %v1279_v55  ;;  %vm1409_vm10 = vcmp.gt.f32.partialorder %v1279_v55, 0.0  ;;  %v1367_v19 = vadd.f32 %v2129_v43, %v2613_v50  ;;  %vm2215_vm15 = vmmov 0  }
 0x2b6   :  { %v1358_v60 = vpop.f32.mrf.mxu0  ;;  %v1506_v23 = vsel %vm1410_vm9, %v1282_v56, %v1458_v62  ;;  %v1351_v5 = vadd.f32 %v2724_v1, %v2613_v50  ;;  %v1354_v56 = vadd.f32 %v2742_v38, %v2613_v50  ;;  %v1346_v38 = vadd.f32 %v2613_v50, %v2745_v42 }
 0x2b7   :  { %v1505_v21 = vsel %vm1409_vm10, %v1279_v55, %v1457_v63  ;;  %v1479_v53 = vmul.f32 0.2, %v1367_v19  ;;  %vm1431_vm0 = vcmp.gt.f32.partialorder %v1367_v19, 0.0  ;;  %v1611_v42 = vsel %vm1558_vm4, %v1550_v3, 0 }
 0x2b8   :  { %v1544_v4 = vpack.c.bf16 %v1506_v23, %v1505_v21  ;;  %v2130_v16 = vpop.f32.mrf.mxu0  ;;  %v1476_v43 = vmul.f32 0.2, %v1354_v56  ;;  %vm1427_vm5 = vcmp.gt.f32.partialorder %v1351_v5, 0.0  ;;  %vm1428_vm6 = vcmp.gt.f32.partialorder %v1354_v56, 0.0 }
 0x2b9   :  { %1943 = vmatpush3.bf16.xpose.msra.mxu1 %v1578_v47  ;;  %v1370_v33 = vadd.f32 %v2130_v16, %v2613_v50  ;;  %v1527_v35 = vsel %vm1431_vm0, %v1367_v19, %v1479_v53  ;;  %vm1426_vm8 = vcmp.gt.f32.partialorder %v1346_v38, 0.0  ;;  %v1716_v54 = vstv %s2835_s8  ;;  %s2217_s8 = smov [#allocation3]  }
 0x2ba   :  { %2158 = vmatprep.subr.msk.bf16.mxu1 %vm1558_vm4, %v1546_v40  ;;  %v1361_v2 = vpop.f32.mrf.mxu0  ;;  %v1359_v40 = vadd.f32 %v2613_v50, %v1358_v60  ;;  %v1343_v60 = vadd.f32 %v2613_v50, %v2735_v24  ;;  %v1524_v1 = vsel %vm1428_vm6, %v1354_v56, %v1476_v43  ;;  %s1776_s23 = sshll.u32 %s2217_s8, 4  ;;  %s1777_s23 = int_to_ptr.vmem [resolvable:$true] %s1776_s23 }
 0x2bb   :  { %v1480_v28 = vmul.f32 0.2, %v1370_v33  ;;  %vm1432_vm1 = vcmp.gt.f32.partialorder %v1370_v33, 0.0  ;;  %v1362_v17 = vadd.f32 %v2613_v50, %v1361_v2  ;;  %s2192_s24 = scalar_lea.vmem %s1777_s23, 48  ;;  %s2196_s25 = scalar_lea.vmem %s1777_s23, 64 }
 0x2bc   :  { %v2133_v18 = vpop.f32.mrf.mxu0  ;;  %v1477_v15 = vmul.f32 0.2, %v1359_v40  ;;  %vm1429_vm2 = vcmp.gt.f32.partialorder %v1359_v40, 0.0  ;;  %v1473_v21 = vmul.f32 0.2, %v1343_v60  ;;  %vm1425_vm7 = vcmp.gt.f32.partialorder %v1343_v60, 0.0  ;;  %p2193_p0 = scmp.ne.s32.totalorder %s1777_s23, %s2192_s24  ;;  %p2197_p1 = scmp.lt.s32.totalorder %s1777_s23, %s1777_s23 }
 0x2bd   :  { %v1383_v20 = vadd.f32 %v2133_v18, %v2613_v50  ;;  %v1528_v47 = vsel %vm1432_vm1, %v1370_v33, %v1480_v28  ;;  %v1478_v39 = vmul.f32 0.2, %v1362_v17  ;;  %vm1430_vm3 = vcmp.gt.f32.partialorder %v1362_v17, 0.0  ;;  %p2198_p2 = scmp.lt.s32.totalorder %s2196_s25, %s2192_s24 }
 0x2be   :  { %v1374_v44 = vpop.f32.mrf.mxu0  ;;  %v1555_v37 = vpack.c.bf16 %v1528_v47, %v1527_v35  ;;  %v1525_v34 = vsel %vm1429_vm2, %v1359_v40, %v1477_v15  ;;  %v1521_v16 = vsel %vm1425_vm7, %v1343_v60, %v1473_v21 }
 0x2bf   :  { %v1483_v51 = vmul.f32 0.2, %v1383_v20  ;;  %vm1435_vm11 = vcmp.gt.f32.partialorder %v1383_v20, 0.0  ;;  %v1375_v31 = vadd.f32 %v2613_v50, %v1374_v44  ;;  %v1526_v55 = vsel %vm1430_vm3, %v1362_v17, %v1478_v39  ;;  %p2199_p3 = por %p2198_p2, %p2197_p1 }
 0x2c0   :  { %v2134_v48 = vpop.f32.mrf.mxu0  ;;  %v1626_v41 = vsel %vm1558_vm4, %v1555_v37, 0 }
 0x2c1   :  { %1945 = vmatpush3.bf16.xpose.msra.mxu1 %v1575_v58  ;;  %v1386_v49 = vadd.f32 %v2134_v48, %v2613_v50  ;;  %v1531_v27 = vsel %vm1435_vm11, %v1383_v20, %v1483_v51  ;;  %vm1433_vm13 = vcmp.gt.f32.partialorder %v1375_v31, 0.0  ;;  %v1475_v58 = vmul.f32 0.2, %v1351_v5  ;;  %p2200_p4 = pnand %p2199_p3, %p2193_p0 }
 0x2c2   :  { %2159 = vmatprep.subr.msk.bf16.mxu1 %vm1558_vm4, %v1545_v57  ;;  %v1377_v6 = vpop.f32.mrf.mxu0  ;;  %v1554_v57 = vpack.c.bf16 %v1526_v55, %v1525_v34 }
 0x2c3   :  { %v1484_v52 = vmul.f32 0.2, %v1386_v49  ;;  %vm1436_vm12 = vcmp.gt.f32.partialorder %v1386_v49, 0.0  ;;  %v1523_v63 = vsel %vm1427_vm5, %v1351_v5, %v1475_v58 }
 0x2c4   :  { %v1623_v62 = vsel %vm1558_vm4, %v1554_v57, 0  ;;  %v1553_v23 = vpack.c.bf16 %v1524_v1, %v1523_v63 }
 0x2c5   :  { %v1532_v7 = vsel %vm1436_vm12, %v1386_v49, %v1484_v52 }
 0x2c6   :  { %v1557_v13 = vpack.c.bf16 %v1532_v7, %v1531_v27 }
 0x2c8   :  { %v1632_v32 = vsel %vm1558_vm4, %v1557_v13, 0 }
 0x2c9   :  { %1947 = vmatpush3.bf16.xpose.msra.mxu1 %v1572_v10  ;;  %v1620_v10 = vsel %vm1558_vm4, %v1553_v23, 0 }
 0x2ca   :  { %2160 = vmatprep.subr.msk.bf16.mxu1 %vm1558_vm4, %v1544_v4  ;;  %v1474_v4 = vmul.f32 0.2, %v1346_v38 }
 0x2cc   :  { %v1522_v2 = vsel %vm1426_vm8, %v1346_v38, %v1474_v4 }
 0x2cd   :  { %v1552_v24 = vpack.c.bf16 %v1522_v2, %v1521_v16 }
 0x2d1   :  { %1949 = vmatpush3.bf16.xpose.msra.mxu1 %v1569_v8  ;;  %v1617_v8 = vsel %vm1558_vm4, %v1552_v24, 0 }
 0x2d2   :  { %2161 = vmatprep.subr.msk.bf16.mxu1 %vm1558_vm4, %v1543_v9  ;;  %v1378_v9 = vadd.f32 %v2613_v50, %v1377_v6  ;;  %v1614_v50 = vsel %vm1558_vm4, %v1551_v61, 0 }
 0x2d4   :  { %v1482_v22 = vmul.f32 0.2, %v1378_v9  ;;  %vm1434_vm14 = vcmp.gt.f32.partialorder %v1378_v9, 0.0 }
 0x2d6   :  { %v1530_v26 = vsel %vm1434_vm14, %v1378_v9, %v1482_v22 }
 0x2d9   :  { %1951 = vmatpush3.bf16.xpose.msra.mxu1 %v1566_v45 }
 0x2da   :  { %2162 = vmatprep.subr.msk.bf16.mxu1 %vm1558_vm4, %v1542_v14  ;;  %v1481_v14 = vmul.f32 0.2, %v1375_v31 }
 0x2dc   :  { %v1529_v36 = vsel %vm1433_vm13, %v1375_v31, %v1481_v14  ;;  %v1745_v14 = vlaneseq }
 0x2dd   :  { %v1556_v46 = vpack.c.bf16 %v1530_v26, %v1529_v36 }
 0x2df   :  { %v1629_v29 = vsel %vm1558_vm4, %v1556_v46, 0 }
 0x2e1   :  { %1953 = vmatpush3.bf16.xpose.msra.mxu1 %v1563_v25 }
 0x2e2   :  { %2135 = vmatprep.subr.bf16.mxu1 %v2214_v11 }
 0x2e8   :  { %1955 = vmatmul.mubr.msk.bf16.vlgmr.msra.gmra.mxu1 %vm1558_vm4, %v2608_v12 }
 0x2e9   :  { %2136 = vmatpush3.bf16.xpose.msra.mxu1 %v1632_v32  ;;  %2151 = vmatprep.mubr.msk.bf16.mxu1 %vm2215_vm15, %v2214_v11  ;;  %v1746_v32 = vshrl.u32 %v1745_v14, 7 }
 0x2ea   :  { %2137 = vmatprep.subr.bf16.mxu1 %v2214_v11 }
 0x2f1   :  { %2138 = vmatpush3.bf16.xpose.msra.mxu1 %v1629_v29 }
 0x2f2   :  { %2139 = vmatprep.subr.bf16.mxu1 %v2214_v11 }
 0x2f9   :  { %2140 = vmatpush3.bf16.xpose.msra.mxu1 %v1626_v41 }
 0x2fa   :  { %2141 = vmatprep.subr.bf16.mxu1 %v2214_v11 }
 0x301   :  { %2142 = vmatpush3.bf16.xpose.msra.mxu1 %v1623_v62 }
 0x302   :  { %2143 = vmatprep.subr.bf16.mxu1 %v2214_v11 }
 0x309   :  { %2144 = vmatpush3.bf16.xpose.msra.mxu1 %v1620_v10 }
 0x30a   :  { %2145 = vmatprep.subr.bf16.mxu1 %v2214_v11 }
 0x311   :  { %2146 = vmatpush3.bf16.xpose.msra.mxu1 %v1617_v8 }
 0x312   :  { %2147 = vmatprep.subr.bf16.mxu1 %v2214_v11 }
 0x319   :  { %2148 = vmatpush3.bf16.xpose.msra.mxu1 %v1614_v50 }
 0x31a   :  { %2149 = vmatprep.subr.bf16.mxu1 %v2214_v11  ;;  %v2216_v11 = vmov 1966171168  }
 0x31b   :  { %v1743_v13 = vunpack.c.l.s4 %v2216_v11 }
 0x31d   :  { %v1744_v19 = vunpack.c.0.s8 %v1743_v13 }
 0x31f   :  { %v1747_v26 = vsub.s32 %v1744_v19, %v1746_v32 }
 0x321   :  { %2150 = vmatpush3.bf16.xpose.msra.mxu1 %v1611_v42 }
 0x328   :  { %2152 = vmatmul.mubr.msk.bf16.vlgmr.msra.gmra.mxu1 %vm1558_vm4, %v2608_v12  ;;  %vm1767_vm4 = vcmp.lt.s32.totalorder %v1745_v14, 384 }
 0x3a8   :  { %v1668_v18 = vpop.f32.mrf.mxu1 }
 0x3a9   :  { %v1717_v30 = vadd.f32 %v1716_v54, %v1668_v18 }
 0x3aa   :  { %v1670_v44 = vpop.f32.mrf.mxu1 }
 0x3ab   :  { %v1718_v61 = vadd.f32 %v1716_v54, %v1670_v44  ;;  %v1850_v20 = vmul.f32 -1.442695, %v1717_v30 }
 0x3ac   :  { %v1672_v45 = vpop.f32.mrf.mxu1 }
 0x3ad   :  { %v1851_v49 = vmul.f32 -1.442695, %v1718_v61  ;;  %2180 = vpow2.f32 %v1850_v20 }
 0x3ae   :  { %v1673_v48 = vpop.f32.mrf.mxu1 }
 0x3af   :  { %2182 = vpow2.f32 %v1851_v49 }
 0x3ba   :  { %v2181_v6 = vpop.eup %2180 }
 0x3bb   :  { %v1729_v27 = vadd.f32 1.0, %v2181_v6 }
 0x3bc   :  { %v2183_v25 = vpop.eup %2182 }
 0x3bd   :  { %v1730_v31 = vadd.f32 1.0, %v2183_v25 }
 0x3e8   :  { %v1709_v59 = vpop.f32.mrf.mxu1 }
 0x3e9   :  { %v1719_v0 = vadd.f32 %v1716_v54, %v1709_v59 }
 0x3ea   :  { %v2153_v3 = vpop.f32.mrf.mxu1 }
 0x3eb   :  { %v1852_v51 = vmul.f32 -1.442695, %v1719_v0 }
 0x3ec   :  { %v1712_v52 = vpop.f32.mrf.mxu1 }
 0x3ed   :  { %2184 = vpow2.f32 %v1852_v51 }
 0x3ee   :  { %v2154_v12 = vpop.f32.mrf.mxu1  ;;  %2186 = vrcp.f32 %v1729_v27 }
 0x3ef   :  { %2188 = vrcp.f32 %v1730_v31 }
 0x3fa   :  { %v2185_v7 = vpop.eup %2184 }
 0x3fb   :  { %v1731_v9 = vadd.f32 1.0, %v2185_v7  ;;  %v2187_v22 = vpop.eup %2186 }
 0x3fc   :  { %v2189_v33 = vpop.eup %2188 }
 0x3fd   :  { %2190 = vrcp.f32 %v1731_v9  ;;  %v1741_v36 = vcombine.low %v2187_v22, %v2189_v33 }
 0x3ff   :  { %v1748_v53 = vrot.slane %v1741_v36, %v1747_v26 }
 0x40a   :  { %v2191_v46 = vpop.eup %2190 }
 0x40b   :  { %v1755_v28 = vrot.slane %v2191_v46, %v1747_v26 }
 0x40d   :  { %v1756_v29 = vcombine.low %v1748_v53, %v1755_v28 }
 0x40f   :  { %v1763_v35 = vrot.slane %v1756_v29, %v1747_v26 }
 0x411   :  { %1769 = vst.msk [vmem:[#allocation3] sm:$0x7] %vm1767_vm4, %v1763_v35 }
 0x412   :  { %2203 = shalt.err (!%p2200_p4)
}
 0x413   :  { %1779 = dma.vmem_to_hbm [thread:$0]  %s1777_s23, 48, %s2836_s9, [#allocation4]  }
 0x414   :  { %2212 = dma.done.wait [#allocation4], 48  }
 0x415   :  { %2213 = vsyncadd [#allocation4], 4294967248 }
 0x416   :  { %1783 = vsyncpa [#allocation4], 1 }

</bundles_post_ra>
